<compile_context>
chip_gen: v7x
topology: tpu7x:2x2x1
jax: 0.10.0
libtpu: 0.0.40
codegen_flags: <defaults>
</compile_context>

<pallas_src>
import functools

import jax
import jax.numpy as jnp
from jax import lax
from jax.experimental import pallas as pl
from jax.experimental.pallas import tpu as pltpu


# ---------------------------------------------------------------------------
# Pallas kernel: fused 3x3 conv (3 MXU matmuls) + folded BN + ReLU
# ---------------------------------------------------------------------------
def _conv3x3_bn_relu_kernel(xs_ref, w_ref, s_ref, b_ref, o_ref, *, H, W):
    """One batch image, one output-channel tile.

    xs_ref: ((H+2)*W, 3*Cin)  bf16  dx-packed, height-padded activations
    w_ref : (3, 3*Cin, tco)   bf16  per-dy packed weights
    s_ref : (1, tco)          f32   folded BN scale
    b_ref : (1, tco)          f32   folded BN bias (conv bias + BN folded)
    o_ref : (H*W, tco)
    """
    M = H * W
    tco = o_ref.shape[-1]
    acc = jnp.zeros((M, tco), jnp.float32)
    # 3 partial matmuls (one per vertical tap); bf16 inputs, f32 accumulate.
    for dy in range(3):
        xt = xs_ref[dy * W:dy * W + M, :]          # aligned static row window
        acc = acc + jnp.dot(xt, w_ref[dy], preferred_element_type=jnp.float32)
    y = acc * s_ref[...] + b_ref[...]              # fused folded-BN epilogue
    y = jnp.maximum(y, 0.0)                        # fused ReLU
    o_ref[...] = y.astype(o_ref.dtype)


def _cout_tile(cout):
    for t in (256, 128):                           # wide, lane-dense tiles
        if cout % t == 0:
            return t
    return cout                                    # fall back to full extent


def conv3x3_bn_relu(x_nhwc, w_hwio, scale, bias, *, out_dtype=jnp.bfloat16):
    """relu(conv2d(x, w, stride=1, pad=1) * scale + bias); NHWC in/out."""
    B, H, W, Cin = x_nhwc.shape
    kh, kw, cin2, Cout = w_hwio.shape
    assert (kh, kw, cin2) == (3, 3, Cin)

    Hp = H + 2
    M = H * W
    K = 3 * Cin

    # Host-side glue (cheap XLA ops): zero-pad, pack the 3 horizontal taps into
    # the channel axis, flatten spatial -> GEMM rows.  bf16 halves HBM traffic.
    xb = x_nhwc.astype(jnp.bfloat16)
    xp = jnp.pad(xb, ((0, 0), (1, 1), (1, 1), (0, 0)))
    xs = jnp.concatenate([xp[:, :, dx:dx + W, :] for dx in range(3)], axis=-1)
    xs = xs.reshape(B, Hp * W, K)
    wk = w_hwio.astype(jnp.bfloat16).reshape(3, K, Cout)
    s2 = scale.reshape(1, Cout).astype(jnp.float32)
    b2 = bias.reshape(1, Cout).astype(jnp.float32)

    tco = _cout_tile(Cout)
    # TODO(synk): add output-row (M) tiling with a 2-row halo for large feature
    # maps; at these sizes one image per grid step fits comfortably in VMEM.
    out = pl.pallas_call(
        functools.partial(_conv3x3_bn_relu_kernel, H=H, W=W),
        out_shape=jax.ShapeDtypeStruct((B, M, Cout), out_dtype),
        grid=(B, Cout // tco),
        in_specs=[
            pl.BlockSpec((None, Hp * W, K), lambda b, co: (b, 0, 0)),
            pl.BlockSpec((3, K, tco), lambda b, co: (0, 0, co)),
            pl.BlockSpec((1, tco), lambda b, co: (0, co)),
            pl.BlockSpec((1, tco), lambda b, co: (0, co)),
        ],
        out_specs=pl.BlockSpec((None, M, tco), lambda b, co: (b, 0, co)),
        compiler_params=pltpu.CompilerParams(
            dimension_semantics=("parallel", "parallel")),
    )(xs, wk, s2, b2)
    return out.reshape(B, H, W, Cout)


# ---------------------------------------------------------------------------
# Deterministic parameters (Conv2d weight+bias, BatchNorm folded for inference)
# ---------------------------------------------------------------------------
def _fold_bn(gamma, beta, mean, var, conv_bias, eps=1e-5):
    scale = gamma / jnp.sqrt(var + eps)
    bias = beta + scale * (conv_bias - mean)
    return scale, bias


def make_bottleneck_params(key, in_ch, out_ch, eps=1e-5):
    ks = jax.random.split(key, 6)

    def he(k, cin, cout):
        std = (2.0 / (9 * cin)) ** 0.5
        return std * jax.random.normal(k, (3, 3, cin, cout), jnp.float32)

    def bn(k, c):
        k1, k2, k3, k4 = jax.random.split(k, 4)
        gamma = 1.0 + 0.1 * jax.random.normal(k1, (c,), jnp.float32)
        beta = 0.1 * jax.random.normal(k2, (c,), jnp.float32)
        mean = 0.1 * jax.random.normal(k3, (c,), jnp.float32)
        var = 1.0 + 0.1 * jax.random.uniform(k4, (c,), jnp.float32)
        return gamma, beta, mean, var

    w1 = he(ks[0], in_ch, out_ch)
    cb1 = 0.05 * jax.random.normal(ks[1], (out_ch,), jnp.float32)
    s1, b1 = _fold_bn(*bn(ks[2], out_ch), cb1, eps)
    w2 = he(ks[3], out_ch, out_ch)
    cb2 = 0.05 * jax.random.normal(ks[4], (out_ch,), jnp.float32)
    s2, b2 = _fold_bn(*bn(ks[5], out_ch), cb2, eps)
    return {"w1": w1, "s1": s1, "b1": b1, "w2": w2, "s2": s2, "b2": b2}


# ---------------------------------------------------------------------------
# Forward pass (NCHW external interface, matching the PyTorch module)
# ---------------------------------------------------------------------------
# TODO(synk): BatchNorm uses inference-mode running statistics folded into
# scale/bias; training-mode batch statistics are not computed in-kernel.
def bottleneck_forward(x_nchw, params):
    x = jnp.transpose(x_nchw.astype(jnp.float32), (0, 2, 3, 1))     # NCHW->NHWC
    h = conv3x3_bn_relu(x, params["w1"], params["s1"], params["b1"],
                        out_dtype=jnp.bfloat16)        # inter-stage act in bf16
    y = conv3x3_bn_relu(h, params["w2"], params["s2"], params["b2"],
                        out_dtype=jnp.float32)
    return jnp.transpose(y, (0, 3, 1, 2))                           # NHWC->NCHW


# ---------------------------------------------------------------------------
# Pure-JAX reference (same bf16-in / f32-accumulate quantization)
# ---------------------------------------------------------------------------
def _reference_forward(x_nchw, params):
    def conv(x, w, s, b, out_dtype):
        y = lax.conv_general_dilated(
            x.astype(jnp.bfloat16), w.astype(jnp.bfloat16),
            window_strides=(1, 1), padding=((1, 1), (1, 1)),
            dimension_numbers=("NHWC", "HWIO", "NHWC"),
            preferred_element_type=jnp.float32)
        y = jnp.maximum(y * s.reshape(1, 1, 1, -1) + b.reshape(1, 1, 1, -1), 0.0)
        return y.astype(out_dtype)

    x = jnp.transpose(x_nchw.astype(jnp.float32), (0, 2, 3, 1))
    h = conv(x, params["w1"], params["s1"], params["b1"], jnp.bfloat16)
    y = conv(h, params["w2"], params["s2"], params["b2"], jnp.float32)
    return jnp.transpose(y, (0, 3, 1, 2))


# ---------------------------------------------------------------------------
if __name__ == "__main__":
    key = jax.random.PRNGKey(0)
    pkey, xkey = jax.random.split(key)

    in_ch, out_ch = 32, 128                     # small, lane-friendly channels
    params = make_bottleneck_params(pkey, in_ch, out_ch)
    x = jax.random.normal(xkey, (2, in_ch, 16, 16), jnp.float32)

    y = jax.jit(bottleneck_forward)(x, params)
    jax.block_until_ready(y)
    assert y.shape == (2, out_ch, 16, 16), y.shape

    y_ref = _reference_forward(x, params)
    err = float(jnp.max(jnp.abs(y - y_ref)))
    assert err < 5e-2, f"max abs err vs reference: {err}"

    print("KERNEL_OK")
</pallas_src>

<mosaic_0001>
module attributes {stable_mosaic.version = 11 : i64} {
  func.func @_conv3x3_bn_relu_kernel(%arg0: i32, %arg1: i32, %arg2: memref<1x288x96xbf16, #tpu.memory_space<vmem>>, %arg3: memref<3x96x128xbf16, #tpu.memory_space<vmem>>, %arg4: memref<1x128xf32, #tpu.memory_space<vmem>>, %arg5: memref<1x128xf32, #tpu.memory_space<vmem>>, %arg6: memref<1x256x128xbf16, #tpu.memory_space<vmem>>) attributes {dimension_semantics = [#tpu.dimension_semantics<parallel>, #tpu.dimension_semantics<parallel>], iteration_bounds = array<i64: 2, 1>, scalar_prefetch = 0 : i64, scratch_operands = 0 : i64, tpu.core_type = #tpu.core_type<tc>, window_params = [{transform_indices = @transform_0, window_bounds = array<i64: 1, 288, 96>}, {transform_indices = @transform_1, window_bounds = array<i64: 3, 96, 128>}, {transform_indices = @transform_2, window_bounds = array<i64: 1, 128>}, {transform_indices = @transform_3, window_bounds = array<i64: 1, 128>}, {transform_indices = @transform_4, window_bounds = array<i64: 1, 256, 128>}]} {
    %cst = arith.constant 0.000000e+00 : f32
    %0 = vector.broadcast %cst : f32 to vector<256x128xf32>
    %c0 = arith.constant 0 : index
    %c0_0 = arith.constant 0 : index
    %c0_1 = arith.constant 0 : index
    %1 = vector.load %arg2[%c0, %c0_0, %c0_1] : memref<1x288x96xbf16, #tpu.memory_space<vmem>>, vector<1x256x96xbf16>
    %2 = vector.shape_cast %1 : vector<1x256x96xbf16> to vector<256x96xbf16>
    %c0_2 = arith.constant 0 : index
    %c0_3 = arith.constant 0 : index
    %c0_4 = arith.constant 0 : index
    %3 = vector.load %arg3[%c0_2, %c0_3, %c0_4] : memref<3x96x128xbf16, #tpu.memory_space<vmem>>, vector<1x96x128xbf16>
    %4 = vector.shape_cast %3 : vector<1x96x128xbf16> to vector<96x128xbf16>
    %cst_5 = arith.constant dense<0.000000e+00> : vector<256x128xf32>
    %5 = tpu.matmul %2, %4, %cst_5 {dimension_numbers = #tpu.dot_dimension_numbers<[1], [0], [0], [1], [0, 0, 1, 1], [], []>} : vector<256x96xbf16>, vector<96x128xbf16>, vector<256x128xf32> -> vector<256x128xf32>
    %6 = arith.addf %0, %5 : vector<256x128xf32>
    %c0_6 = arith.constant 0 : index
    %c16 = arith.constant 16 : index
    %c0_7 = arith.constant 0 : index
    %7 = vector.load %arg2[%c0_6, %c16, %c0_7] : memref<1x288x96xbf16, #tpu.memory_space<vmem>>, vector<1x256x96xbf16>
    %8 = vector.shape_cast %7 : vector<1x256x96xbf16> to vector<256x96xbf16>
    %c1 = arith.constant 1 : index
    %c0_8 = arith.constant 0 : index
    %c0_9 = arith.constant 0 : index
    %9 = vector.load %arg3[%c1, %c0_8, %c0_9] : memref<3x96x128xbf16, #tpu.memory_space<vmem>>, vector<1x96x128xbf16>
    %10 = vector.shape_cast %9 : vector<1x96x128xbf16> to vector<96x128xbf16>
    %cst_10 = arith.constant dense<0.000000e+00> : vector<256x128xf32>
    %11 = tpu.matmul %8, %10, %cst_10 {dimension_numbers = #tpu.dot_dimension_numbers<[1], [0], [0], [1], [0, 0, 1, 1], [], []>} : vector<256x96xbf16>, vector<96x128xbf16>, vector<256x128xf32> -> vector<256x128xf32>
    %12 = arith.addf %6, %11 : vector<256x128xf32>
    %c0_11 = arith.constant 0 : index
    %c32 = arith.constant 32 : index
    %c0_12 = arith.constant 0 : index
    %13 = vector.load %arg2[%c0_11, %c32, %c0_12] : memref<1x288x96xbf16, #tpu.memory_space<vmem>>, vector<1x256x96xbf16>
    %14 = vector.shape_cast %13 : vector<1x256x96xbf16> to vector<256x96xbf16>
    %c2 = arith.constant 2 : index
    %c0_13 = arith.constant 0 : index
    %c0_14 = arith.constant 0 : index
    %15 = vector.load %arg3[%c2, %c0_13, %c0_14] : memref<3x96x128xbf16, #tpu.memory_space<vmem>>, vector<1x96x128xbf16>
    %16 = vector.shape_cast %15 : vector<1x96x128xbf16> to vector<96x128xbf16>
    %cst_15 = arith.constant dense<0.000000e+00> : vector<256x128xf32>
    %17 = tpu.matmul %14, %16, %cst_15 {dimension_numbers = #tpu.dot_dimension_numbers<[1], [0], [0], [1], [0, 0, 1, 1], [], []>} : vector<256x96xbf16>, vector<96x128xbf16>, vector<256x128xf32> -> vector<256x128xf32>
    %18 = arith.addf %12, %17 : vector<256x128xf32>
    %c0_16 = arith.constant 0 : index
    %c0_17 = arith.constant 0 : index
    %19 = vector.load %arg4[%c0_16, %c0_17] : memref<1x128xf32, #tpu.memory_space<vmem>>, vector<1x128xf32>
    %20 = vector.broadcast %19 : vector<1x128xf32> to vector<256x128xf32>
    %21 = arith.mulf %18, %20 : vector<256x128xf32>
    %c0_18 = arith.constant 0 : index
    %c0_19 = arith.constant 0 : index
    %22 = vector.load %arg5[%c0_18, %c0_19] : memref<1x128xf32, #tpu.memory_space<vmem>>, vector<1x128xf32>
    %23 = vector.broadcast %22 : vector<1x128xf32> to vector<256x128xf32>
    %24 = arith.addf %21, %23 : vector<256x128xf32>
    %cst_20 = arith.constant 0.000000e+00 : f32
    %25 = vector.broadcast %cst_20 : f32 to vector<256x128xf32>
    %26 = arith.maximumf %24, %25 : vector<256x128xf32>
    %27 = arith.truncf %26 : vector<256x128xf32> to vector<256x128xbf16>
    %c0_21 = arith.constant 0 : index
    %c0_22 = arith.constant 0 : index
    %c0_23 = arith.constant 0 : index
    %28 = vector.load %arg6[%c0_21, %c0_22, %c0_23] : memref<1x256x128xbf16, #tpu.memory_space<vmem>>, vector<1x256x128xbf16>
    %29 = vector.shape_cast %28 : vector<1x256x128xbf16> to vector<256x128xbf16>
    %30 = vector.shape_cast %27 : vector<256x128xbf16> to vector<1x256x128xbf16>
    tpu.vector_store %arg6[%c0_21, %c0_22, %c0_23], %30 {strides = array<i32>} : memref<1x256x128xbf16, #tpu.memory_space<vmem>>, vector<1x256x128xbf16>,
    return
  }
  func.func @transform_0(%arg0: i32, %arg1: i32) -> (i32, i32, i32) {
    %c0_i32 = arith.constant 0 : i32
    %c0_i32_0 = arith.constant 0 : i32
    %c0_i32_1 = arith.constant 0 : i32
    return %arg0, %c0_i32, %c0_i32_0 : i32, i32, i32
  }
  func.func @transform_1(%arg0: i32, %arg1: i32) -> (i32, i32, i32) {
    %c0_i32 = arith.constant 0 : i32
    %c0_i32_0 = arith.constant 0 : i32
    %c0_i32_1 = arith.constant 0 : i32
    return %c0_i32, %c0_i32_0, %arg1 : i32, i32, i32
  }
  func.func @transform_2(%arg0: i32, %arg1: i32) -> (i32, i32) {
    %c0_i32 = arith.constant 0 : i32
    %c0_i32_0 = arith.constant 0 : i32
    return %c0_i32, %arg1 : i32, i32
  }
  func.func @transform_3(%arg0: i32, %arg1: i32) -> (i32, i32) {
    %c0_i32 = arith.constant 0 : i32
    %c0_i32_0 = arith.constant 0 : i32
    return %c0_i32, %arg1 : i32, i32
  }
  func.func @transform_4(%arg0: i32, %arg1: i32) -> (i32, i32, i32) {
    %c0_i32 = arith.constant 0 : i32
    %c0_i32_0 = arith.constant 0 : i32
    return %arg0, %c0_i32, %arg1 : i32, i32, i32
  }
}

module attributes {stable_mosaic.version = 11 : i64} {
  func.func @_conv3x3_bn_relu_kernel(%arg0: i32, %arg1: i32, %arg2: memref<1x288x384xbf16, #tpu.memory_space<vmem>>, %arg3: memref<3x384x128xbf16, #tpu.memory_space<vmem>>, %arg4: memref<1x128xf32, #tpu.memory_space<vmem>>, %arg5: memref<1x128xf32, #tpu.memory_space<vmem>>, %arg6: memref<1x256x128xf32, #tpu.memory_space<vmem>>) attributes {dimension_semantics = [#tpu.dimension_semantics<parallel>, #tpu.dimension_semantics<parallel>], iteration_bounds = array<i64: 2, 1>, scalar_prefetch = 0 : i64, scratch_operands = 0 : i64, tpu.core_type = #tpu.core_type<tc>, window_params = [{transform_indices = @transform_0, window_bounds = array<i64: 1, 288, 384>}, {transform_indices = @transform_1, window_bounds = array<i64: 3, 384, 128>}, {transform_indices = @transform_2, window_bounds = array<i64: 1, 128>}, {transform_indices = @transform_3, window_bounds = array<i64: 1, 128>}, {transform_indices = @transform_4, window_bounds = array<i64: 1, 256, 128>}]} {
    %cst = arith.constant 0.000000e+00 : f32
    %0 = vector.broadcast %cst : f32 to vector<256x128xf32>
    %c0 = arith.constant 0 : index
    %c0_0 = arith.constant 0 : index
    %c0_1 = arith.constant 0 : index
    %1 = vector.load %arg2[%c0, %c0_0, %c0_1] : memref<1x288x384xbf16, #tpu.memory_space<vmem>>, vector<1x256x384xbf16>
    %2 = vector.shape_cast %1 : vector<1x256x384xbf16> to vector<256x384xbf16>
    %c0_2 = arith.constant 0 : index
    %c0_3 = arith.constant 0 : index
    %c0_4 = arith.constant 0 : index
    %3 = vector.load %arg3[%c0_2, %c0_3, %c0_4] : memref<3x384x128xbf16, #tpu.memory_space<vmem>>, vector<1x384x128xbf16>
    %4 = vector.shape_cast %3 : vector<1x384x128xbf16> to vector<384x128xbf16>
    %cst_5 = arith.constant dense<0.000000e+00> : vector<256x128xf32>
    %5 = tpu.matmul %2, %4, %cst_5 {dimension_numbers = #tpu.dot_dimension_numbers<[1], [0], [0], [1], [0, 0, 1, 1], [], []>} : vector<256x384xbf16>, vector<384x128xbf16>, vector<256x128xf32> -> vector<256x128xf32>
    %6 = arith.addf %0, %5 : vector<256x128xf32>
    %c0_6 = arith.constant 0 : index
    %c16 = arith.constant 16 : index
    %c0_7 = arith.constant 0 : index
    %7 = vector.load %arg2[%c0_6, %c16, %c0_7] : memref<1x288x384xbf16, #tpu.memory_space<vmem>>, vector<1x256x384xbf16>
    %8 = vector.shape_cast %7 : vector<1x256x384xbf16> to vector<256x384xbf16>
    %c1 = arith.constant 1 : index
    %c0_8 = arith.constant 0 : index
    %c0_9 = arith.constant 0 : index
    %9 = vector.load %arg3[%c1, %c0_8, %c0_9] : memref<3x384x128xbf16, #tpu.memory_space<vmem>>, vector<1x384x128xbf16>
    %10 = vector.shape_cast %9 : vector<1x384x128xbf16> to vector<384x128xbf16>
    %cst_10 = arith.constant dense<0.000000e+00> : vector<256x128xf32>
    %11 = tpu.matmul %8, %10, %cst_10 {dimension_numbers = #tpu.dot_dimension_numbers<[1], [0], [0], [1], [0, 0, 1, 1], [], []>} : vector<256x384xbf16>, vector<384x128xbf16>, vector<256x128xf32> -> vector<256x128xf32>
    %12 = arith.addf %6, %11 : vector<256x128xf32>
    %c0_11 = arith.constant 0 : index
    %c32 = arith.constant 32 : index
    %c0_12 = arith.constant 0 : index
    %13 = vector.load %arg2[%c0_11, %c32, %c0_12] : memref<1x288x384xbf16, #tpu.memory_space<vmem>>, vector<1x256x384xbf16>
    %14 = vector.shape_cast %13 : vector<1x256x384xbf16> to vector<256x384xbf16>
    %c2 = arith.constant 2 : index
    %c0_13 = arith.constant 0 : index
    %c0_14 = arith.constant 0 : index
    %15 = vector.load %arg3[%c2, %c0_13, %c0_14] : memref<3x384x128xbf16, #tpu.memory_space<vmem>>, vector<1x384x128xbf16>
    %16 = vector.shape_cast %15 : vector<1x384x128xbf16> to vector<384x128xbf16>
    %cst_15 = arith.constant dense<0.000000e+00> : vector<256x128xf32>
    %17 = tpu.matmul %14, %16, %cst_15 {dimension_numbers = #tpu.dot_dimension_numbers<[1], [0], [0], [1], [0, 0, 1, 1], [], []>} : vector<256x384xbf16>, vector<384x128xbf16>, vector<256x128xf32> -> vector<256x128xf32>
    %18 = arith.addf %12, %17 : vector<256x128xf32>
    %c0_16 = arith.constant 0 : index
    %c0_17 = arith.constant 0 : index
    %19 = vector.load %arg4[%c0_16, %c0_17] : memref<1x128xf32, #tpu.memory_space<vmem>>, vector<1x128xf32>
    %20 = vector.broadcast %19 : vector<1x128xf32> to vector<256x128xf32>
    %21 = arith.mulf %18, %20 : vector<256x128xf32>
    %c0_18 = arith.constant 0 : index
    %c0_19 = arith.constant 0 : index
    %22 = vector.load %arg5[%c0_18, %c0_19] : memref<1x128xf32, #tpu.memory_space<vmem>>, vector<1x128xf32>
    %23 = vector.broadcast %22 : vector<1x128xf32> to vector<256x128xf32>
    %24 = arith.addf %21, %23 : vector<256x128xf32>
    %cst_20 = arith.constant 0.000000e+00 : f32
    %25 = vector.broadcast %cst_20 : f32 to vector<256x128xf32>
    %26 = arith.maximumf %24, %25 : vector<256x128xf32>
    %c0_21 = arith.constant 0 : index
    %c0_22 = arith.constant 0 : index
    %c0_23 = arith.constant 0 : index
    %27 = vector.load %arg6[%c0_21, %c0_22, %c0_23] : memref<1x256x128xf32, #tpu.memory_space<vmem>>, vector<1x256x128xf32>
    %28 = vector.shape_cast %27 : vector<1x256x128xf32> to vector<256x128xf32>
    %29 = vector.shape_cast %26 : vector<256x128xf32> to vector<1x256x128xf32>
    tpu.vector_store %arg6[%c0_21, %c0_22, %c0_23], %29 {strides = array<i32>} : memref<1x256x128xf32, #tpu.memory_space<vmem>>, vector<1x256x128xf32>,
    return
  }
  func.func @transform_0(%arg0: i32, %arg1: i32) -> (i32, i32, i32) {
    %c0_i32 = arith.constant 0 : i32
    %c0_i32_0 = arith.constant 0 : i32
    %c0_i32_1 = arith.constant 0 : i32
    return %arg0, %c0_i32, %c0_i32_0 : i32, i32, i32
  }
  func.func @transform_1(%arg0: i32, %arg1: i32) -> (i32, i32, i32) {
    %c0_i32 = arith.constant 0 : i32
    %c0_i32_0 = arith.constant 0 : i32
    %c0_i32_1 = arith.constant 0 : i32
    return %c0_i32, %c0_i32_0, %arg1 : i32, i32, i32
  }
  func.func @transform_2(%arg0: i32, %arg1: i32) -> (i32, i32) {
    %c0_i32 = arith.constant 0 : i32
    %c0_i32_0 = arith.constant 0 : i32
    return %c0_i32, %arg1 : i32, i32
  }
  func.func @transform_3(%arg0: i32, %arg1: i32) -> (i32, i32) {
    %c0_i32 = arith.constant 0 : i32
    %c0_i32_0 = arith.constant 0 : i32
    return %c0_i32, %arg1 : i32, i32
  }
  func.func @transform_4(%arg0: i32, %arg1: i32) -> (i32, i32, i32) {
    %c0_i32 = arith.constant 0 : i32
    %c0_i32_0 = arith.constant 0 : i32
    return %arg0, %c0_i32, %arg1 : i32, i32, i32
  }
}

</mosaic_0001>

<bundles_post_ra>
// kernel: bottleneck_forward.2
= control target key start
LH: loop header
LB: loop body
LE: loop exit
PB: predicated region body
PF: predicated region fallthrough
CT: control target
= control target key end

     0   :  { %s2340_s15 = smov 0   ;;  %s2342_s16 = smov 0   ;;  %s2627_s0 = inlined_call_operand.vmem [shape: bf16[2,288,96], index: 0, kind: input, shape index: {}]   ;;  %s2628_s1 = inlined_call_operand.vmem [shape: bf16[3,96,128], index: 1, kind: input, shape index: {}]   ;;  %s2629_s2 = inlined_call_operand.vmem [shape: f32[1,128], index: 2, kind: input, shape index: {}]   ;;  %s2630_s3 = inlined_call_operand.vmem [shape: f32[1,128], index: 3, kind: input, shape index: {}]   ;;  %s2631_s4 = inlined_call_operand.vmem [shape: bf16[2,256,128], index: 4, kind: output, shape index: {}]  }
   0x1   :  { %s2344_s17 = smov 0  }
   0x2 LB: > { %s26_s18 = sadd.s32 1, %s2309_s16  ;;  %p1650_p0 = scmp.ge.s32.totalorder %s2313_s17, 1  ;;  %s2313_s17 = sphi %s2344_s17, %s14_s17   ;;  %s2309_s16 = sphi %s2342_s16, %s2633_s16   ;;  %s2305_s15 = sphi %s2340_s15, %s2632_s15  }
   0x3   : > { %p28_p1 = scmp.ge.s32.totalorder %s26_s18, 2  ;;  %p201_p2 = scmp.lt.s32.totalorder %s2313_s17, 3 }
   0x5   : > { %s2635_s18 = smov (%p28_p1, %s26_s18), 0  ;;  %p202_p3 = pnand %p1650_p0, %p201_p2 }
   0x6   : > { %v2240_v0 = vld [vmem:[%s2628_s1 + $0x30] sm:$0xff] (!%p202_p3)   ;;  %p240_p4 = scmp.lt.s32.totalorder (!%p202_p3), %s2305_s15, 1  ;;  %v2241_v1 = vld [vmem:[%s2628_s1] sm:$0xff] (!%p202_p3)   ;;  %v2242_v2 = vld [vmem:[%s2628_s1 + $0x38] sm:$0xff] (!%p202_p3)   ;;  %vm439_vm0 = vcmask (!%p202_p3), 785408  }
   0x7   : > { %205 = sbr.rel (%p202_p3) target bundleno = 346 (0x15a), region = 36  ;;  %2007 = vmatprep.subr.bf16.mxu1 (!%p202_p3), %v2240_v0  ;;  %2051 = vmatprep.subr.bf16.mxu0 (!%p202_p3), %v2241_v1  ;;  %v2243_v3 = vld [vmem:[%s2628_s1 + $0x8] sm:$0xff] (!%p202_p3)   ;;  %v2244_v4 = vld [vmem:[%s2628_s1 + $0x40] sm:$0xff] (!%p202_p3)   ;;  %v2245_v5 = vld [vmem:[%s2628_s1 + $0x10] sm:$0xff] (!%p202_p3)  }
   0x8   : > { %2008 = vmatpush3.bf16.msra.mxu1 (!%p202_p3), %v2240_v0  ;;  %2052 = vmatpush3.bf16.msra.mxu0 (!%p202_p3), %v2241_v1  ;;  %v2246_v6 = vld [vmem:[%s2628_s1 + $0x48] sm:$0xff] (!%p202_p3)   ;;  %v2247_v7 = vld [vmem:[%s2628_s1 + $0x18] sm:$0xff] (!%p202_p3)   ;;  %v2248_v8 = vld [vmem:[%s2628_s1 + $0x50] sm:$0xff] (!%p202_p3)  }
   0x9   : > { %2009 = vmatprep.subr.bf16.mxu1 (!%p202_p3), %v2242_v2  ;;  %2053 = vmatprep.subr.bf16.mxu0 (!%p202_p3), %v2243_v3  ;;  %v2396_v9 = vld [vmem:[%s2628_s1 + $0x20] sm:$0xff] (!%p202_p3)   ;;  %v2250_v12 = vld [vmem:[%s2628_s1 + $0x58] sm:$0xff] (!%p202_p3)   ;;  %v2251_v13 = vld [vmem:[%s2628_s1 + $0x28] sm:$0xff] (!%p202_p3)  }
   0xa   : > { %v2255_v14 = vld [vmem:[%s2628_s1 + $0x60] sm:$0xff] (!%p202_p3)   ;;  %v2256_v17 = vld [vmem:[%s2628_s1 + $0x68] sm:$0xff] (!%p202_p3)   ;;  %v2259_v18 = vld [vmem:[%s2628_s1 + $0x70] sm:$0xff] (!%p202_p3)  }
   0xb   : > { %v2262_v21 = vld [vmem:[%s2628_s1 + $0x78] sm:$0xff] (!%p202_p3)   ;;  %v2263_v22 = vld [vmem:[%s2628_s1 + $0x80] sm:$0xff] (!%p202_p3)   ;;  %v2266_v25 = vld [vmem:[%s2628_s1 + $0x88] sm:$0xff] (!%p202_p3)  }
   0xc   : > { %2010 = vmatpush3.bf16.msra.mxu1 (!%p202_p3), %v2242_v2  ;;  %2054 = vmatpush3.bf16.msra.mxu0 (!%p202_p3), %v2243_v3 }
   0xd   : > { %2011 = vmatprep.subr.bf16.mxu1 (!%p202_p3), %v2244_v4  ;;  %2055 = vmatprep.subr.bf16.mxu0 (!%p202_p3), %v2245_v5 }
   0xe   : > { %s2637_s15 = smov (!%p240_p4, %s2305_s15), 1 }
   0xf   : > { %s2215_s5 = smul.u32 144, %s2637_s15  ;;  %s1813_s19 = sshll.u32 %s2637_s15, 7 }
  0x10   : > { %2012 = vmatpush3.bf16.msra.mxu1 %v2244_v4  ;;  %2056 = vmatpush3.bf16.msra.mxu0 %v2245_v5  ;;  %v2520_v4 = vld [vmem:[%s2629_s2] ss:$0 sm:$0xff]  ;;  %s2539_s22 = scalar_lea.vmem %s2631_s4, %s1813_s19 }
  0x11   : > { %s2388_s12 = scalar_lea.vmem %s2627_s0, %s2215_s5  ;;  %2013 = vmatprep.subr.bf16.mxu1 %v2246_v6  ;;  %2057 = vmatprep.subr.bf16.mxu0 %v2247_v7 }
  0x12   : > { %v2252_v10 = vld [vmem:[%s2388_s12 + $0x8] sm:$0xff]   ;;  %v2253_v11 = vld [vmem:[%s2388_s12] sm:$0xff]   ;;  %v2254_v15 = vld [vmem:[%s2388_s12 + $0x10] sm:$0xff]  }
  0x13   : > { %2019 = vmatprep.mubr.msk.bf16.mxu1 %vm439_vm0, %v2252_v10  ;;  %2063 = vmatprep.mubr.msk.bf16.mxu0 %vm439_vm0, %v2253_v11  ;;  %v2257_v16 = vld [vmem:[%s2388_s12 + $0x18] sm:$0xff]   ;;  %v2258_v19 = vld [vmem:[%s2388_s12 + $0x20] sm:$0xff]   ;;  %v2260_v20 = vld [vmem:[%s2388_s12 + $0x28] sm:$0xff]  }
  0x14   : > { %2014 = vmatpush3.bf16.msra.mxu1 %v2246_v6  ;;  %2058 = vmatpush3.bf16.msra.mxu0 %v2247_v7  ;;  %v2261_v23 = vld [vmem:[%s2388_s12 + $0x30] sm:$0xff]   ;;  %v2264_v24 = vld [vmem:[%s2388_s12 + $0x38] sm:$0xff]   ;;  %v2265_v26 = vld [vmem:[%s2388_s12 + $0x40] sm:$0xff]  }
  0x15   : > { %2015 = vmatprep.subr.bf16.mxu1 %v2248_v8  ;;  %2059 = vmatprep.subr.bf16.mxu0 %v2396_v9  ;;  %v2267_v27 = vld [vmem:[%s2388_s12 + $0x48] sm:$0xff]   ;;  %v2268_v28 = vld [vmem:[%s2388_s12 + $0x10] sm:$0xff]   ;;  %v2270_v30 = vld [vmem:[%s2388_s12 + $0x18] sm:$0xff]  }
  0x16   : > { %v2269_v29 = vld [vmem:[%s2388_s12 + $0x50] sm:$0xff]   ;;  %v2271_v31 = vld [vmem:[%s2388_s12 + $0x58] sm:$0xff]   ;;  %v2272_v32 = vld [vmem:[%s2388_s12 + $0x20] sm:$0xff]  }
  0x17   : > { %v2273_v33 = vld [vmem:[%s2388_s12 + $0x60] sm:$0xff]   ;;  %v2274_v34 = vld [vmem:[%s2388_s12 + $0x28] sm:$0xff]   ;;  %v2276_v36 = vld [vmem:[%s2388_s12 + $0x30] sm:$0xff]  }
  0x18   : > { %2016 = vmatpush3.bf16.msra.mxu1 %v2248_v8  ;;  %2060 = vmatpush3.bf16.msra.mxu0 %v2396_v9  ;;  %v2275_v35 = vld [vmem:[%s2388_s12 + $0x68] sm:$0xff]   ;;  %v2277_v37 = vld [vmem:[%s2388_s12 + $0x70] sm:$0xff]   ;;  %v2278_v38 = vld [vmem:[%s2388_s12 + $0x38] sm:$0xff]  }
  0x19   : > { %2017 = vmatprep.subr.bf16.mxu1 %v2250_v12  ;;  %2061 = vmatprep.subr.bf16.mxu0 %v2251_v13  ;;  %v2279_v39 = vld [vmem:[%s2388_s12 + $0x78] sm:$0xff]   ;;  %v2280_v40 = vld [vmem:[%s2388_s12 + $0x40] sm:$0xff]   ;;  %v2282_v42 = vld [vmem:[%s2388_s12 + $0x48] sm:$0xff]  }
  0x1a   : > { %v2281_v41 = vld [vmem:[%s2388_s12 + $0x80] sm:$0xff]   ;;  %v2283_v43 = vld [vmem:[%s2388_s12 + $0x50] sm:$0xff]   ;;  %v2284_v44 = vld [vmem:[%s2388_s12 + $0x58] sm:$0xff]  }
  0x1b   : > { %v2285_v45 = vld [vmem:[%s2388_s12 + $0x60] sm:$0xff]   ;;  %v2286_v46 = vld [vmem:[%s2388_s12 + $0x68] sm:$0xff]   ;;  %v2287_v47 = vld [vmem:[%s2388_s12 + $0x70] sm:$0xff]  }
  0x1c   : > { %2018 = vmatpush3.bf16.msra.mxu1 %v2250_v12  ;;  %2062 = vmatpush3.bf16.msra.mxu0 %v2251_v13  ;;  %v2288_v48 = vld [vmem:[%s2388_s12 + $0x78] sm:$0xff]   ;;  %v2289_v49 = vld [vmem:[%s2388_s12 + $0x80] sm:$0xff]   ;;  %v2290_v50 = vld [vmem:[%s2388_s12 + $0x88] sm:$0xff]  }
  0x1d   : > { %2139 = vmatprep.subr.bf16.mxu1 %v2241_v1  ;;  %2095 = vmatprep.subr.bf16.mxu0 %v2255_v14 }
  0x1f   : > { %2020 = vmatmul.mubr.msk.bf16.vlgmr.msra.gmra.mrb[0].mxu1 %vm439_vm0, %v2254_v15  ;;  %2064 = vmatmul.mubr.msk.bf16.vlgmr.msra.gmra.mrb[0].mxu0 %vm439_vm0, %v2252_v10 }
  0x20   : > { %2145 = vmatpush3.bf16.msra.mxu1 %v2241_v1  ;;  %2096 = vmatpush3.bf16.msra.mxu0 %v2255_v14 }
  0x21   : > { %2023 = vmatprep.mubr.msk.bf16.mxu1 %vm439_vm0, %v2257_v16  ;;  %2097 = vmatprep.subr.bf16.mxu0 %v2256_v17 }
  0x22   : > { %2067 = vmatprep.mubr.msk.bf16.mxu0 %vm439_vm0, %v2254_v15  ;;  %2140 = vmatprep.subr.bf16.mxu1 %v2243_v3 }
  0x24   : > { %2146 = vmatpush3.bf16.msra.mxu1 %v2243_v3  ;;  %2098 = vmatpush3.bf16.msra.mxu0 %v2256_v17 }
  0x25   : > { %2141 = vmatprep.subr.bf16.mxu1 %v2245_v5  ;;  %2099 = vmatprep.subr.bf16.mxu0 %v2259_v18 }
  0x27   : > { %2024 = vmatmul.mubr.msk.bf16.gmra.mrb[4].mxu1 %vm439_vm0, %v2258_v19  ;;  %2068 = vmatmul.mubr.msk.bf16.gmra.mrb[4].mxu0 %vm439_vm0, %v2257_v16 }
  0x28   : > { %2027 = vmatprep.mubr.msk.bf16.mxu1 %vm439_vm0, %v2260_v20  ;;  %2100 = vmatpush3.bf16.msra.mxu0 %v2259_v18 }
  0x29   : > { %2071 = vmatprep.mubr.msk.bf16.mxu0 %vm439_vm0, %v2258_v19  ;;  %2101 = vmatprep.subr.bf16.mxu0 %v2262_v21 }
  0x2a   : > { %2147 = vmatpush3.bf16.msra.mxu1 %v2245_v5 }
  0x2b   : > { %2142 = vmatprep.subr.bf16.mxu1 %v2247_v7 }
  0x2c   : > { %2102 = vmatpush3.bf16.msra.mxu0 %v2262_v21 }
  0x2d   : > { %2103 = vmatprep.subr.bf16.mxu0 %v2263_v22 }
  0x2e   : > { %2148 = vmatpush3.bf16.msra.mxu1 %v2247_v7  ;;  %v2525_v7 = vld [vmem:[%s2630_s3] ss:$0 sm:$0xff] }
  0x2f   : > { %2028 = vmatmul.mubr.msk.bf16.gmra.mrb[8].mxu1 %vm439_vm0, %v2261_v23  ;;  %2143 = vmatprep.subr.bf16.mxu1 %v2396_v9 }
  0x30   : > { %2072 = vmatmul.mubr.msk.bf16.gmra.mrb[8].mxu0 %vm439_vm0, %v2260_v20  ;;  %2031 = vmatprep.mubr.msk.bf16.mxu1 %vm439_vm0, %v2264_v24 }
  0x31   : > { %2075 = vmatprep.mubr.msk.bf16.mxu0 %vm439_vm0, %v2261_v23  ;;  %2104 = vmatpush3.bf16.msra.mxu0 %v2263_v22 }
  0x32   : > { %2105 = vmatprep.subr.bf16.mxu0 %v2266_v25  ;;  %2149 = vmatpush3.bf16.msra.mxu1 %v2396_v9 }
  0x33   : > { %2144 = vmatprep.subr.bf16.mxu1 %v2251_v13 }
  0x35   : > { %2106 = vmatpush3.bf16.msra.mxu0 %v2266_v25 }
  0x36   : > { %2150 = vmatpush3.bf16.msra.mxu1 %v2251_v13 }
  0x37   : > { %2032 = vmatmul.mubr.msk.bf16.gmra.mrb[12].mxu1 %vm439_vm0, %v2265_v26 }
  0x38   : > { %2076 = vmatmul.mubr.msk.bf16.gmra.mrb[12].mxu0 %vm439_vm0, %v2264_v24  ;;  %2035 = vmatprep.mubr.msk.bf16.mxu1 %vm439_vm0, %v2267_v27 }
  0x39   : > { %2107 = vmatprep.mubr.msk.bf16.mxu0 %vm439_vm0, %v2268_v28 }
  0x3f   : > { %2036 = vmatmul.mubr.msk.bf16.gmra.mrb[16].mxu1 %vm439_vm0, %v2269_v29 }
  0x40   : > { %2108 = vmatmul.mubr.msk.bf16.vlgmr.msra.gmra.mrb[0].mxu0 %vm439_vm0, %v2270_v30  ;;  %2039 = vmatprep.mubr.msk.bf16.mxu1 %vm439_vm0, %v2271_v31 }
  0x41   : > { %2111 = vmatprep.mubr.msk.bf16.mxu0 %vm439_vm0, %v2272_v32 }
  0x47   : > { %2040 = vmatmul.mubr.msk.bf16.gmra.mrb[20].mxu1 %vm439_vm0, %v2273_v33 }
  0x48   : > { %2112 = vmatmul.mubr.msk.bf16.gmra.mrb[4].mxu0 %vm439_vm0, %v2274_v34  ;;  %2043 = vmatprep.mubr.msk.bf16.mxu1 %vm439_vm0, %v2275_v35 }
  0x49   : > { %2115 = vmatprep.mubr.msk.bf16.mxu0 %vm439_vm0, %v2276_v36 }
  0x4f   : > { %2044 = vmatmul.mubr.msk.bf16.gmra.mrb[24].mxu1 %vm439_vm0, %v2277_v37 }
  0x50   : > { %2116 = vmatmul.mubr.msk.bf16.gmra.mrb[8].mxu0 %vm439_vm0, %v2278_v38  ;;  %2047 = vmatprep.mubr.msk.bf16.mxu1 %vm439_vm0, %v2279_v39 }
  0x51   : > { %2119 = vmatprep.mubr.msk.bf16.mxu0 %vm439_vm0, %v2280_v40 }
  0x57   : > { %2048 = vmatmul.mubr.msk.bf16.gmra.mrb[28].mxu1 %vm439_vm0, %v2281_v41 }
  0x58   : > { %2120 = vmatmul.mubr.msk.bf16.gmra.mrb[12].mxu0 %vm439_vm0, %v2282_v42  ;;  %2079 = vmatprep.mubr.msk.bf16.mxu1 %vm439_vm0, %v2265_v26 }
  0x59   : > { %2123 = vmatprep.mubr.msk.bf16.mxu0 %vm439_vm0, %v2283_v43 }
  0x5f   : > { %2080 = vmatmul.mubr.msk.bf16.vlgmr.msra.gmra.mrb[16].mxu1 %vm439_vm0, %v2267_v27 }
  0x60   : > { %2124 = vmatmul.mubr.msk.bf16.gmra.mrb[16].mxu0 %vm439_vm0, %v2284_v44  ;;  %2083 = vmatprep.mubr.msk.bf16.mxu1 %vm439_vm0, %v2269_v29 }
  0x61   : > { %2127 = vmatprep.mubr.msk.bf16.mxu0 %vm439_vm0, %v2285_v45 }
  0x67   : > { %2084 = vmatmul.mubr.msk.bf16.gmra.mrb[20].mxu1 %vm439_vm0, %v2271_v31 }
  0x68   : > { %2128 = vmatmul.mubr.msk.bf16.gmra.mrb[20].mxu0 %vm439_vm0, %v2286_v46  ;;  %2087 = vmatprep.mubr.msk.bf16.mxu1 %vm439_vm0, %v2273_v33 }
  0x69   : > { %2131 = vmatprep.mubr.msk.bf16.mxu0 %vm439_vm0, %v2287_v47 }
  0x6f   : > { %2088 = vmatmul.mubr.msk.bf16.gmra.mrb[24].mxu1 %vm439_vm0, %v2275_v35 }
  0x70   : > { %2132 = vmatmul.mubr.msk.bf16.gmra.mrb[24].mxu0 %vm439_vm0, %v2288_v48  ;;  %2091 = vmatprep.mubr.msk.bf16.mxu1 %vm439_vm0, %v2277_v37 }
  0x71   : > { %2135 = vmatprep.mubr.msk.bf16.mxu0 %vm439_vm0, %v2289_v49 }
  0x77   : > { %2092 = vmatmul.mubr.msk.bf16.gmra.mrb[28].mxu1 %vm439_vm0, %v2279_v39 }
  0x78   : > { %2136 = vmatmul.mubr.msk.bf16.gmra.mrb[28].mxu0 %vm439_vm0, %v2290_v50 }
  0xf2   : > { %v2021_v51 = vpop.f32.mrb[0].mxu1 }
  0xf3   : > { %v522_v52 = vpop.f32.mrb[1].mxu1 }
  0xf4   : > { %v2022_v53 = vpop.f32.mrb[2].mxu1 }
  0xf5   : > { %v525_v54 = vpop.f32.mrb[3].mxu1 }
  0xfa   : > { %v2025_v55 = vpop.f32.mrb[4].mxu1 }
  0xfb   : > { %v538_v56 = vpop.f32.mrb[5].mxu1 }
  0xfc   : > { %v2026_v57 = vpop.f32.mrb[6].mxu1 }
  0xfd   : > { %v541_v58 = vpop.f32.mrb[7].mxu1 }
 0x102   : > { %v2029_v59 = vpop.f32.mrb[8].mxu1 }
 0x103   : > { %v554_v60 = vpop.f32.mrb[9].mxu1 }
 0x104   : > { %v2030_v61 = vpop.f32.mrb[10].mxu1 }
 0x105   : > { %v2507_v62 = vpop.f32.mrb[11].mxu1 }
 0x10a   : > { %v2509_v63 = vpop.f32.mrb[12].mxu1 }
 0x10b   : > { %v2511_v0 = vpop.f32.mrb[13].mxu1 }
 0x10c   : > { %v2513_v1 = vpop.f32.mrb[14].mxu1 }
 0x10d   : > { %v2515_v2 = vpop.f32.mrb[15].mxu1 }
 0x113   : > { %v2109_v3 = vpop.f32.mrb[0].mxu0 }
 0x114   : > { %v2151_v5 = vadd.f32 %v2109_v3, %v2021_v51  ;;  %v1097_v6 = vpop.f32.mrb[1].mxu0 }
 0x115   : > { %v2152_v8 = vadd.f32 %v1097_v6, %v522_v52  ;;  %v2110_v9 = vpop.f32.mrb[2].mxu0 }
 0x116   : > { %v1265_v10 = vmul.f32 %v2151_v5, %v2520_v4  ;;  %v2153_v11 = vadd.f32 %v2110_v9, %v2022_v53  ;;  %v1100_v12 = vpop.f32.mrb[3].mxu0 }
 0x117   : > { %v1263_v13 = vmul.f32 %v2152_v8, %v2520_v4  ;;  %v2154_v14 = vadd.f32 %v1100_v12, %v525_v54 }
 0x118   : > { %v1304_v15 = vadd.f32 %v2525_v7, %v1265_v10  ;;  %v1266_v16 = vmul.f32 %v2153_v11, %v2520_v4 }
 0x119   : > { %v1302_v17 = vadd.f32 %v2525_v7, %v1263_v13  ;;  %v1264_v18 = vmul.f32 %v2154_v14, %v2520_v4 }
 0x11a   : > { %v1305_v19 = vadd.f32 %v2525_v7, %v1266_v16  ;;  %v1336_v22 = vmax.f32 %v1304_v15, 0.0 }
 0x11b   : > { %v1303_v20 = vadd.f32 %v2525_v7, %v1264_v18  ;;  %v2113_v21 = vpop.f32.mrb[4].mxu0  ;;  %v1334_v26 = vmax.f32 %v1302_v17, 0.0 }
 0x11c   : > { %v1337_v23 = vmax.f32 %v1305_v19, 0.0  ;;  %v2155_v24 = vadd.f32 %v2113_v21, %v2025_v55  ;;  %v1113_v25 = vpop.f32.mrb[5].mxu0 }
 0x11d   : > { %v1335_v27 = vmax.f32 %v1303_v20, 0.0  ;;  %v2156_v28 = vadd.f32 %v1113_v25, %v538_v56  ;;  %v2114_v29 = vpop.f32.mrb[6].mxu0 }
 0x11e   : > { %v1854_v30 = vpack.c.bf16 %v1337_v23, %v1336_v22  ;;  %v1269_v31 = vmul.f32 %v2155_v24, %v2520_v4  ;;  %v2157_v32 = vadd.f32 %v2114_v29, %v2026_v57  ;;  %v1116_v33 = vpop.f32.mrb[7].mxu0 }
 0x11f   : > { %v1849_v34 = vpack.c.bf16 %v1335_v27, %v1334_v26  ;;  %v1267_v35 = vmul.f32 %v2156_v28, %v2520_v4  ;;  %v2158_v36 = vadd.f32 %v1116_v33, %v541_v58 }
 0x120   : > { %1926 = vst [vmem:[%s2539_s22 + $0x8] sm:$0xff] %v1854_v30   ;;  %v1308_v37 = vadd.f32 %v2525_v7, %v1269_v31  ;;  %v1270_v38 = vmul.f32 %v2157_v32, %v2520_v4 }
 0x121   : > { %1850 = vst [vmem:[%s2539_s22] sm:$0xff] %v1849_v34   ;;  %v1306_v39 = vadd.f32 %v2525_v7, %v1267_v35  ;;  %v1268_v40 = vmul.f32 %v2158_v36, %v2520_v4 }
 0x122   : > { %v1309_v41 = vadd.f32 %v2525_v7, %v1270_v38  ;;  %v1340_v44 = vmax.f32 %v1308_v37, 0.0 }
 0x123   : > { %v1307_v42 = vadd.f32 %v2525_v7, %v1268_v40  ;;  %v2117_v43 = vpop.f32.mrb[8].mxu0  ;;  %v1338_v48 = vmax.f32 %v1306_v39, 0.0 }
 0x124   : > { %v1341_v45 = vmax.f32 %v1309_v41, 0.0  ;;  %v2159_v46 = vadd.f32 %v2117_v43, %v2029_v59  ;;  %v1129_v47 = vpop.f32.mrb[9].mxu0 }
 0x125   : > { %v1339_v49 = vmax.f32 %v1307_v42, 0.0  ;;  %v2160_v50 = vadd.f32 %v1129_v47, %v554_v60  ;;  %v2118_v51 = vpop.f32.mrb[10].mxu0 }
 0x126   : > { %v1864_v52 = vpack.c.bf16 %v1341_v45, %v1340_v44  ;;  %v1273_v53 = vmul.f32 %v2159_v46, %v2520_v4  ;;  %v2161_v54 = vadd.f32 %v2118_v51, %v2030_v61  ;;  %v1132_v55 = vpop.f32.mrb[11].mxu0 }
 0x127   : > { %v1859_v56 = vpack.c.bf16 %v1339_v49, %v1338_v48  ;;  %v1271_v57 = vmul.f32 %v2160_v50, %v2520_v4  ;;  %v2162_v58 = vadd.f32 %v1132_v55, %v2507_v62 }
 0x128   : > { %1928 = vst [vmem:[%s2539_s22 + $0x18] sm:$0xff] %v1864_v52   ;;  %v1312_v3 = vadd.f32 %v2525_v7, %v1273_v53  ;;  %v1274_v59 = vmul.f32 %v2161_v54, %v2520_v4 }
 0x129   : > { %1927 = vst [vmem:[%s2539_s22 + $0x10] sm:$0xff] %v1859_v56   ;;  %v1310_v5 = vadd.f32 %v2525_v7, %v1271_v57  ;;  %v1272_v60 = vmul.f32 %v2162_v58, %v2520_v4 }
 0x12a   : > { %v1313_v6 = vadd.f32 %v2525_v7, %v1274_v59  ;;  %v1344_v9 = vmax.f32 %v1312_v3, 0.0 }
 0x12b   : > { %v1311_v61 = vadd.f32 %v2525_v7, %v1272_v60  ;;  %v2121_v8 = vpop.f32.mrb[12].mxu0  ;;  %v1342_v12 = vmax.f32 %v1310_v5, 0.0 }
 0x12c   : > { %v1345_v10 = vmax.f32 %v1313_v6, 0.0  ;;  %v2163_v62 = vadd.f32 %v2121_v8, %v2509_v63  ;;  %v1145_v11 = vpop.f32.mrb[13].mxu0 }
 0x12d   : > { %v1343_v13 = vmax.f32 %v1311_v61, 0.0  ;;  %v2164_v14 = vadd.f32 %v1145_v11, %v2511_v0  ;;  %v2122_v15 = vpop.f32.mrb[14].mxu0 }
 0x12e   : > { %v1874_v16 = vpack.c.bf16 %v1345_v10, %v1344_v9  ;;  %v1277_v17 = vmul.f32 %v2163_v62, %v2520_v4  ;;  %v2165_v18 = vadd.f32 %v2122_v15, %v2513_v1  ;;  %v1148_v19 = vpop.f32.mrb[15].mxu0 }
 0x12f   : > { %v1869_v20 = vpack.c.bf16 %v1343_v13, %v1342_v12  ;;  %v1275_v21 = vmul.f32 %v2164_v14, %v2520_v4  ;;  %v2166_v22 = vadd.f32 %v1148_v19, %v2515_v2 }
 0x130   : > { %1930 = vst [vmem:[%s2539_s22 + $0x28] sm:$0xff] %v1874_v16   ;;  %v1316_v63 = vadd.f32 %v2525_v7, %v1277_v17  ;;  %v1278_v23 = vmul.f32 %v2165_v18, %v2520_v4 }
 0x131   : > { %1929 = vst [vmem:[%s2539_s22 + $0x20] sm:$0xff] %v1869_v20   ;;  %v1314_v0 = vadd.f32 %v2525_v7, %v1275_v21  ;;  %v1276_v24 = vmul.f32 %v2166_v22, %v2520_v4 }
 0x132   : > { %v1317_v25 = vadd.f32 %v2525_v7, %v1278_v23  ;;  %v2081_v26 = vpop.f32.mrb[16].mxu1  ;;  %v1348_v29 = vmax.f32 %v1316_v63, 0.0 }
 0x133   : > { %v1315_v1 = vadd.f32 %v2525_v7, %v1276_v24  ;;  %v2125_v27 = vpop.f32.mrb[16].mxu0  ;;  %v791_v28 = vpop.f32.mrb[17].mxu1  ;;  %v1346_v33 = vmax.f32 %v1314_v0, 0.0 }
 0x134   : > { %v1349_v30 = vmax.f32 %v1317_v25, 0.0  ;;  %v2167_v2 = vadd.f32 %v2125_v27, %v2081_v26  ;;  %v1161_v31 = vpop.f32.mrb[17].mxu0  ;;  %v2082_v32 = vpop.f32.mrb[18].mxu1 }
 0x135   : > { %v1347_v34 = vmax.f32 %v1315_v1, 0.0  ;;  %v2168_v35 = vadd.f32 %v1161_v31, %v791_v28  ;;  %v2126_v36 = vpop.f32.mrb[18].mxu0  ;;  %v794_v37 = vpop.f32.mrb[19].mxu1 }
 0x136   : > { %v1884_v38 = vpack.c.bf16 %v1349_v30, %v1348_v29  ;;  %v1281_v39 = vmul.f32 %v2167_v2, %v2520_v4  ;;  %v2169_v40 = vadd.f32 %v2126_v36, %v2082_v32  ;;  %v1164_v41 = vpop.f32.mrb[19].mxu0 }
 0x137   : > { %v1879_v42 = vpack.c.bf16 %v1347_v34, %v1346_v33  ;;  %v1279_v43 = vmul.f32 %v2168_v35, %v2520_v4  ;;  %v2170_v44 = vadd.f32 %v1164_v41, %v794_v37 }
 0x138   : > { %1932 = vst [vmem:[%s2539_s22 + $0x38] sm:$0xff] %v1884_v38   ;;  %v1320_v45 = vadd.f32 %v2525_v7, %v1281_v39  ;;  %v1282_v46 = vmul.f32 %v2169_v40, %v2520_v4 }
 0x139   : > { %1931 = vst [vmem:[%s2539_s22 + $0x30] sm:$0xff] %v1879_v42   ;;  %v1318_v47 = vadd.f32 %v2525_v7, %v1279_v43  ;;  %v1280_v48 = vmul.f32 %v2170_v44, %v2520_v4 }
 0x13a   : > { %v1321_v49 = vadd.f32 %v2525_v7, %v1282_v46  ;;  %v2085_v50 = vpop.f32.mrb[20].mxu1  ;;  %v1352_v54 = vmax.f32 %v1320_v45, 0.0 }
 0x13b   : > { %v1319_v51 = vadd.f32 %v2525_v7, %v1280_v48  ;;  %v2129_v52 = vpop.f32.mrb[20].mxu0  ;;  %v807_v53 = vpop.f32.mrb[21].mxu1  ;;  %v1350_v3 = vmax.f32 %v1318_v47, 0.0 }
 0x13c   : > { %v1353_v55 = vmax.f32 %v1321_v49, 0.0  ;;  %v2171_v56 = vadd.f32 %v2129_v52, %v2085_v50  ;;  %v1177_v57 = vpop.f32.mrb[21].mxu0  ;;  %v2086_v58 = vpop.f32.mrb[22].mxu1 }
 0x13d   : > { %v1351_v59 = vmax.f32 %v1319_v51, 0.0  ;;  %v2172_v5 = vadd.f32 %v1177_v57, %v807_v53  ;;  %v2130_v60 = vpop.f32.mrb[22].mxu0  ;;  %v810_v6 = vpop.f32.mrb[23].mxu1 }
 0x13e   : > { %v1894_v61 = vpack.c.bf16 %v1353_v55, %v1352_v54  ;;  %v1285_v8 = vmul.f32 %v2171_v56, %v2520_v4  ;;  %v2173_v9 = vadd.f32 %v2130_v60, %v2086_v58  ;;  %v1180_v10 = vpop.f32.mrb[23].mxu0 }
 0x13f   : > { %v1889_v62 = vpack.c.bf16 %v1351_v59, %v1350_v3  ;;  %v1283_v11 = vmul.f32 %v2172_v5, %v2520_v4  ;;  %v2174_v12 = vadd.f32 %v1180_v10, %v810_v6 }
 0x140   : > { %1934 = vst [vmem:[%s2539_s22 + $0x48] sm:$0xff] %v1894_v61   ;;  %v1324_v13 = vadd.f32 %v2525_v7, %v1285_v8  ;;  %v1286_v14 = vmul.f32 %v2173_v9, %v2520_v4 }
 0x141   : > { %1933 = vst [vmem:[%s2539_s22 + $0x40] sm:$0xff] %v1889_v62   ;;  %v1322_v15 = vadd.f32 %v2525_v7, %v1283_v11  ;;  %v1284_v16 = vmul.f32 %v2174_v12, %v2520_v4 }
 0x142   : > { %v1325_v17 = vadd.f32 %v2525_v7, %v1286_v14  ;;  %v2089_v18 = vpop.f32.mrb[24].mxu1  ;;  %v1356_v22 = vmax.f32 %v1324_v13, 0.0 }
 0x143   : > { %v1323_v19 = vadd.f32 %v2525_v7, %v1284_v16  ;;  %v2133_v20 = vpop.f32.mrb[24].mxu0  ;;  %v823_v21 = vpop.f32.mrb[25].mxu1  ;;  %v1354_v25 = vmax.f32 %v1322_v15, 0.0 }
 0x144   : > { %v1357_v63 = vmax.f32 %v1325_v17, 0.0  ;;  %v2175_v23 = vadd.f32 %v2133_v20, %v2089_v18  ;;  %v1193_v0 = vpop.f32.mrb[25].mxu0  ;;  %v2090_v24 = vpop.f32.mrb[26].mxu1 }
 0x145   : > { %v1355_v26 = vmax.f32 %v1323_v19, 0.0  ;;  %v2176_v1 = vadd.f32 %v1193_v0, %v823_v21  ;;  %v2134_v27 = vpop.f32.mrb[26].mxu0  ;;  %v826_v28 = vpop.f32.mrb[27].mxu1 }
 0x146   : > { %v1904_v29 = vpack.c.bf16 %v1357_v63, %v1356_v22  ;;  %v1289_v30 = vmul.f32 %v2175_v23, %v2520_v4  ;;  %v2177_v2 = vadd.f32 %v2134_v27, %v2090_v24  ;;  %v1196_v31 = vpop.f32.mrb[27].mxu0 }
 0x147   : > { %v1899_v32 = vpack.c.bf16 %v1355_v26, %v1354_v25  ;;  %v1287_v33 = vmul.f32 %v2176_v1, %v2520_v4  ;;  %v2178_v34 = vadd.f32 %v1196_v31, %v826_v28 }
 0x148   : > { %1936 = vst [vmem:[%s2539_s22 + $0x58] sm:$0xff] %v1904_v29   ;;  %v1328_v35 = vadd.f32 %v2525_v7, %v1289_v30  ;;  %v1290_v36 = vmul.f32 %v2177_v2, %v2520_v4 }
 0x149   : > { %1935 = vst [vmem:[%s2539_s22 + $0x50] sm:$0xff] %v1899_v32   ;;  %v1326_v37 = vadd.f32 %v2525_v7, %v1287_v33  ;;  %v1288_v38 = vmul.f32 %v2178_v34, %v2520_v4 }
 0x14a   : > { %v1329_v39 = vadd.f32 %v2525_v7, %v1290_v36  ;;  %v2093_v40 = vpop.f32.mrb[28].mxu1  ;;  %v1360_v44 = vmax.f32 %v1328_v35, 0.0 }
 0x14b   : > { %v1327_v41 = vadd.f32 %v2525_v7, %v1288_v38  ;;  %v2137_v42 = vpop.f32.mrb[28].mxu0  ;;  %v839_v43 = vpop.f32.mrb[29].mxu1  ;;  %v1358_v49 = vmax.f32 %v1326_v37, 0.0 }
 0x14c   : > { %v1361_v45 = vmax.f32 %v1329_v39, 0.0  ;;  %v2179_v46 = vadd.f32 %v2137_v42, %v2093_v40  ;;  %v1209_v47 = vpop.f32.mrb[29].mxu0  ;;  %v2094_v48 = vpop.f32.mrb[30].mxu1 }
 0x14d   : > { %v1359_v50 = vmax.f32 %v1327_v41, 0.0  ;;  %v2180_v51 = vadd.f32 %v1209_v47, %v839_v43  ;;  %v2138_v52 = vpop.f32.mrb[30].mxu0  ;;  %v842_v53 = vpop.f32.mrb[31].mxu1 }
 0x14e   : > { %v1914_v54 = vpack.c.bf16 %v1361_v45, %v1360_v44  ;;  %v1293_v55 = vmul.f32 %v2179_v46, %v2520_v4  ;;  %v2181_v56 = vadd.f32 %v2138_v52, %v2094_v48  ;;  %v1212_v57 = vpop.f32.mrb[31].mxu0 }
 0x14f   : > { %v1909_v58 = vpack.c.bf16 %v1359_v50, %v1358_v49  ;;  %v1291_v3 = vmul.f32 %v2180_v51, %v2520_v4  ;;  %v2182_v59 = vadd.f32 %v1212_v57, %v842_v53 }
 0x150   : > { %1938 = vst [vmem:[%s2539_s22 + $0x68] sm:$0xff] %v1914_v54   ;;  %v1332_v5 = vadd.f32 %v2525_v7, %v1293_v55  ;;  %v1294_v60 = vmul.f32 %v2181_v56, %v2520_v4 }
 0x151   : > { %1937 = vst [vmem:[%s2539_s22 + $0x60] sm:$0xff] %v1909_v58   ;;  %v1330_v6 = vadd.f32 %v2525_v7, %v1291_v3  ;;  %v1292_v61 = vmul.f32 %v2182_v59, %v2520_v4 }
 0x152   : > { %v1333_v8 = vadd.f32 %v2525_v7, %v1294_v60  ;;  %v1364_v10 = vmax.f32 %v1332_v5, 0.0 }
 0x153   : > { %v1331_v9 = vadd.f32 %v2525_v7, %v1292_v61  ;;  %v1362_v11 = vmax.f32 %v1330_v6, 0.0 }
 0x154   : > { %v1365_v62 = vmax.f32 %v1333_v8, 0.0 }
 0x155   : > { %v1363_v12 = vmax.f32 %v1331_v9, 0.0 }
 0x156   : > { %v1924_v13 = vpack.c.bf16 %v1365_v62, %v1364_v10 }
 0x157   : > { %v1919_v14 = vpack.c.bf16 %v1363_v12, %v1362_v11 }
 0x158   : > { %1940 = vst [vmem:[%s2539_s22 + $0x78] sm:$0xff] %v1924_v13  }
 0x159   : > { %1939 = vst [vmem:[%s2539_s22 + $0x70] sm:$0xff] %v1919_v14  }
 0x15a PF: > { %s14_s17 = sadd.s32 1, %s2313_s17   ;;  %s2632_s15 = smov %s2309_s16 }
 0x15b   : > { %p11_p5 = scmp.ge.s32.totalorder %s14_s17, 4   ;;  %s2633_s16 = smov %s2635_s18 }
 0x15d   :  { %13 = sbr.rel (!%p11_p5) target bundleno = 2 (0x2), region = 77 }

// kernel: bottleneck_forward.3
= control target key start
LH: loop header
LB: loop body
LE: loop exit
PB: predicated region body
PF: predicated region fallthrough
CT: control target
= control target key end

     0   :  { %9 = vsyncpa [#allocation3], 0  ;;  %s5119_s0 = inlined_call_operand.vmem [shape: bf16[2,288,384], index: 0, kind: input, shape index: {}]   ;;  %s5120_s1 = inlined_call_operand.vmem [shape: bf16[3,384,128], index: 1, kind: input, shape index: {}]   ;;  %s5121_s2 = inlined_call_operand.vmem [shape: f32[1,128], index: 2, kind: input, shape index: {}]   ;;  %s5122_s3 = inlined_call_operand.vmem [shape: f32[1,128], index: 3, kind: input, shape index: {}]   ;;  %s5123_s4 = inlined_call_operand.hbm [shape: f32[2,256,128], index: 4, kind: output, shape index: {}]  }
   0x1   :  { %11 = vsyncpa [#allocation3 + $0x1], 0  ;;  %s4098_s15 = smov 0   ;;  %s4100_s16 = smov 0  }
   0x2   :  { %s4102_s17 = smov 0   ;;  %s4104_s18 = smov 0  }
   0x3   :  { %s4106_s19 = smov 0   ;;  %s4108_s20 = smov 0  }
   0x4 LB: > { %s2760_s21 = sadd.s32 4294967295, %s4068_s20   ;;  %s2761_s22 = sadd.s32 4294967294, %s4068_s20   ;;  %s4068_s20 = sphi %s4108_s20, %s17_s20   ;;  %s4064_s19 = sphi %s4106_s19, %s5134_s19   ;;  %s4060_s18 = sphi %s4104_s18, %s5133_s18   ;;  %s4056_s17 = sphi %s4102_s17, %s5132_s17   ;;  %s4052_s16 = sphi %s4100_s16, %s5131_s16   ;;  %s4048_s15 = sphi %s4098_s15, %s5130_s15  }
   0x5   : > { %s29_s23 = sadd.s32 1, %s4064_s19  ;;  %s142_s24 = sadd.s32 1, %s4056_s17 }
   0x6   : > { %p31_p0 = scmp.ge.s32.totalorder %s29_s23, 2  ;;  %p152_p1 = scmp.ne.s32.totalorder %s4056_s17, %s4052_s16 }
   0x7   : > { %p153_p2 = scmp.eq.s32.totalorder %s2760_s21, 1  ;;  %p158_p3 = scmp.ne.s32.totalorder %s4052_s16, %s4048_s15 }
   0x8   : > { %s5136_s23 = smov (%p31_p0, %s29_s23), 0  ;;  %p159_p5 = scmp.eq.s32.totalorder %s2761_s22, 1 }
   0x9   : > { %p4138_p4 = por %p153_p2, %p152_p1  ;;  %s137_s26 = ssub.s32 %s4064_s19, %s5136_s23 }
   0xa   : > { %p2767_p6 = scmp.ge.s32.totalorder %s4068_s20, 1  ;;  %p140_p7 = scmp.eq.s32.totalorder %s137_s26, 0 }
   0xb   : > { %p4145_p8 = por %p159_p5, %p158_p3  ;;  %p204_p9 = scmp.lt.s32.totalorder %s4068_s20, 3 }
   0xc   : > { %s4151_s28 = scalar_select %p140_p7, %s4056_s17, %s142_s24  }
   0xd   : > { %p205_p10 = pnand %p2767_p6, %p204_p9 }
   0xf   : > { %208 = sbr.rel (%p205_p10) target bundleno = 578 (0x242), region = 36 }
  0x16   : > { %v3831_v0 = vld [vmem:[%s5120_s1 + $0x100] sm:$0xff]   ;;  %v3834_v3 = vld [vmem:[%s5120_s1 + $0x108] sm:$0xff]   ;;  %v3837_v6 = vld [vmem:[%s5120_s1 + $0x110] sm:$0xff]   ;;  %p240_p11 = scmp.lt.s32.totalorder %s4060_s18, 1  ;;  %s3044_s5 = sshll.u32 %s4060_s18, 12 }
  0x17   : > { %v4159_v1 = vld [vmem:[%s5120_s1 + $0x140] sm:$0xff]   ;;  %3045 = vmatprep.subr.bf16.mxu0 %v3831_v0  ;;  %v4172_v4 = vld [vmem:[%s5120_s1 + $0x148] sm:$0xff]   ;;  %v4184_v7 = vld [vmem:[%s5120_s1 + $0x150] sm:$0xff]   ;;  %s5065_s9 = scalar_lea.hbm %s5123_s4, %s3044_s5  ;;  %s4070_s11 = smov [#allocation2]  }
  0x18   : > { %v3833_v2 = vld [vmem:[%s5120_s1 + $0xc0] sm:$0xff]   ;;  %3597 = vmatprep.subr.bf16.mxu1 %v4159_v1  ;;  %v3836_v5 = vld [vmem:[%s5120_s1 + $0xc8] sm:$0xff]   ;;  %v3839_v8 = vld [vmem:[%s5120_s1 + $0xd0] sm:$0xff]   ;;  %s241_s21 = scalar_select %p240_p11, %s4060_s18, 1 }
  0x19   : > { %3046 = vmatpush3.bf16.msra.mxu0 %v3833_v2  ;;  %3605 = vmatpush3.bf16.msra.mxu1 %v4159_v1  ;;  %v3840_v9 = vld [vmem:[%s5120_s1 + $0x118] sm:$0xff]   ;;  %v3843_v12 = vld [vmem:[%s5120_s1 + $0x120] sm:$0xff]   ;;  %v3846_v15 = vld [vmem:[%s5120_s1 + $0x128] sm:$0xff]   ;;  %s3994_s12 = sshll.u32 %s4070_s11, 4  ;;  %s3995_s12 = int_to_ptr.vmem [resolvable:$false] %s3994_s12 }
  0x1a   : > { %3047 = vmatprep.subr.bf16.mxu0 %v3834_v3  ;;  %3598 = vmatprep.subr.bf16.mxu1 %v4172_v4  ;;  %v4197_v10 = vld [vmem:[%s5120_s1 + $0x158] sm:$0xff]   ;;  %v4211_v13 = vld [vmem:[%s5120_s1 + $0x160] sm:$0xff]   ;;  %v4225_v16 = vld [vmem:[%s5120_s1 + $0x168] sm:$0xff]   ;;  %s3773_s6 = smul.u32 432, %s241_s21  ;;  %s3996_s13 = scalar_lea.vmem %s3995_s12, 8192 }
  0x1b   : > { %v3842_v11 = vld [vmem:[%s5120_s1 + $0xd8] sm:$0xff]   ;;  %v3845_v14 = vld [vmem:[%s5120_s1 + $0xe0] sm:$0xff]   ;;  %v3848_v17 = vld [vmem:[%s5120_s1 + $0xe8] sm:$0xff]  }
  0x1c   : > { %v3849_v18 = vld [vmem:[%s5120_s1 + $0x130] sm:$0xff]   ;;  %s4246_s24 = scalar_lea.vmem %s5119_s0, %s3773_s6  ;;  %v3852_v21 = vld [vmem:[%s5120_s1 + $0x138] sm:$0xff]   ;;  %v3860_v26 = vld [vmem:[%s5120_s1 + $0x40] sm:$0xff]  }
  0x1d   : > { %3048 = vmatpush3.bf16.msra.mxu0 %v3836_v5  ;;  %3606 = vmatpush3.bf16.msra.mxu1 %v4172_v4  ;;  %v4238_v19 = vld [vmem:[%s5120_s1 + $0x170] sm:$0xff]   ;;  %v4255_v22 = vld [vmem:[%s5120_s1 + $0x178] sm:$0xff]   ;;  %v4262_v24 = vld [vmem:[%s4246_s24 + $0xe0] ss:$12 sps:$4 sm:$0xff]  }
  0x1e   : > { %3049 = vmatprep.subr.bf16.mxu0 %v3837_v6  ;;  %3599 = vmatprep.subr.bf16.mxu1 %v4184_v7  ;;  %v3851_v20 = vld [vmem:[%s5120_s1 + $0xf0] sm:$0xff]   ;;  %v4259_v23 = vld [vmem:[%s4246_s24 + $0x1c] ss:$12 sps:$4 sm:$0xff]   ;;  %v4274_v27 = vld [vmem:[%s4246_s24 + $0x18] ss:$12 sps:$4 sm:$0xff]  }
  0x1f   : > { %853 = vmatprep.mubr.bf16.mxu0 %v4259_v23  ;;  %v3854_v25 = vld [vmem:[%s5120_s1 + $0xf8] sm:$0xff]   ;;  %3485 = vmatprep.mubr.bf16.mxu1 %v4262_v24  ;;  %v3861_v29 = vld [vmem:[%s5120_s1] sm:$0xff]   ;;  %v3862_v30 = vld [vmem:[%s5120_s1 + $0x48] sm:$0xff]  }
  0x20   : > { %v4278_v28 = vld [vmem:[%s4246_s24 + $0xf8] ss:$12 sps:$4 sm:$0xff]   ;;  %v4289_v31 = vld [vmem:[%s4246_s24 + $0x34] ss:$12 sps:$4 sm:$0xff]   ;;  %v4292_v32 = vld [vmem:[%s4246_s24 + $0x110] ss:$12 sps:$4 sm:$0xff]  }
  0x21   : > { %3050 = vmatpush3.bf16.msra.mxu0 %v3839_v8  ;;  %3607 = vmatpush3.bf16.msra.mxu1 %v4184_v7  ;;  %v3863_v33 = vld [vmem:[%s5120_s1 + $0x8] sm:$0xff]   ;;  %v4302_v34 = vld [vmem:[%s4246_s24 + $0x30] ss:$12 sps:$4 sm:$0xff]   ;;  %v4337_v43 = vld [vmem:[%s4246_s24 + $0x158] ss:$12 sps:$4 sm:$0xff]  }
  0x22   : > { %3051 = vmatprep.subr.bf16.mxu0 %v3840_v9  ;;  %3600 = vmatprep.subr.bf16.mxu1 %v4197_v10  ;;  %v3869_v35 = vld [vmem:[%s5120_s1 + $0x50] sm:$0xff]   ;;  %v3871_v38 = vld [vmem:[%s5120_s1 + $0x58] sm:$0xff]   ;;  %v4323_v40 = vld [vmem:[%s4246_s24 + $0x140] ss:$12 sps:$4 sm:$0xff]  }
  0x23   : > { %v4309_v36 = vld [vmem:[%s4246_s24 + $0x128] ss:$12 sps:$4 sm:$0xff]   ;;  %v4319_v39 = vld [vmem:[%s4246_s24 + $0x4c] ss:$12 sps:$4 sm:$0xff]   ;;  %v3878_v44 = vld [vmem:[%s5120_s1 + $0x60] sm:$0xff]  }
  0x24   : > { %v3870_v37 = vld [vmem:[%s5120_s1 + $0x10] sm:$0xff]   ;;  %v3872_v41 = vld [vmem:[%s5120_s1 + $0x18] sm:$0xff]   ;;  %v3879_v45 = vld [vmem:[%s5120_s1 + $0x20] sm:$0xff]  }
  0x25   : > { %3052 = vmatpush3.bf16.msra.mxu0 %v3842_v11  ;;  %3608 = vmatpush3.bf16.msra.mxu1 %v4197_v10  ;;  %v4334_v42 = vld [vmem:[%s4246_s24 + $0x48] ss:$12 sps:$4 sm:$0xff]   ;;  %v4351_v47 = vld [vmem:[%s4246_s24 + $0x64] ss:$12 sps:$4 sm:$0xff]   ;;  %v4368_v51 = vld [vmem:[%s4246_s24 + $0x60] ss:$12 sps:$4 sm:$0xff]  }
  0x26   : > { %3053 = vmatprep.subr.bf16.mxu0 %v3843_v12  ;;  %3601 = vmatprep.subr.bf16.mxu1 %v4211_v13  ;;  %v3880_v46 = vld [vmem:[%s5120_s1 + $0x68] sm:$0xff]   ;;  %v4354_v48 = vld [vmem:[%s4246_s24 + $0x170] ss:$12 sps:$4 sm:$0xff]   ;;  %v3897_v58 = vld [vmem:[%s5120_s1 + $0x80] sm:$0xff]  }
  0x27   : > { %v3881_v49 = vld [vmem:[%s5120_s1 + $0x28] sm:$0xff]   ;;  %v3887_v50 = vld [vmem:[%s5120_s1 + $0x70] sm:$0xff]   ;;  %v3889_v54 = vld [vmem:[%s5120_s1 + $0x78] sm:$0xff]  }
  0x28   : > { %v3886_v52 = vld [vmem:[%s4246_s24 + $0x188] ss:$12 sps:$4 sm:$0xff]   ;;  %v3895_v56 = vld [vmem:[%s4246_s24 + $0x4] ss:$12 sps:$4 sm:$0xff]   ;;  %v3890_v57 = vld [vmem:[%s5120_s1 + $0x38] sm:$0xff]  }
  0x29   : > { %3054 = vmatpush3.bf16.msra.mxu0 %v3845_v14  ;;  %3609 = vmatpush3.bf16.msra.mxu1 %v4211_v13  ;;  %v3888_v53 = vld [vmem:[%s5120_s1 + $0x30] sm:$0xff]   ;;  %v4380_v55 = vld [vmem:[%s4246_s24 + $0x7c] ss:$12 sps:$4 sm:$0xff]   ;;  %v3893_v59 = vld [vmem:[%s4246_s24] ss:$12 sps:$4 sm:$0xff]  }
  0x2a   : > { %3055 = vmatprep.subr.bf16.mxu0 %v3846_v15  ;;  %3602 = vmatprep.subr.bf16.mxu1 %v4225_v16  ;;  %v4395_v60 = vld [vmem:[%s4246_s24 + $0x78] ss:$12 sps:$4 sm:$0xff]   ;;  %v4399_v61 = vld [vmem:[%s4246_s24 + $0x94] ss:$12 sps:$4 sm:$0xff]   ;;  %v3904_v62 = vld [vmem:[%s5120_s1 + $0x88] sm:$0xff]  }
  0x2b   : > { %v3911_v63 = vld [vmem:[%s5120_s1 + $0x90] sm:$0xff]   ;;  %v3918_v2 = vld [vmem:[%s5120_s1 + $0x98] sm:$0xff]   ;;  %v3938_v5 = vld [vmem:[%s5120_s1 + $0x1c0] sm:$0xff]  }
  0x2c   : > { %v4413_v0 = vld [vmem:[%s4246_s24 + $0x90] ss:$12 sps:$4 sm:$0xff]   ;;  %v4427_v3 = vld [vmem:[%s4246_s24 + $0xa8] ss:$12 sps:$4 sm:$0xff]   ;;  %v4449_v9 = vld [vmem:[%s4246_s24 + $0xc0] ss:$12 sps:$4 sm:$0xff]  }
  0x2d   : > { %3056 = vmatpush3.bf16.msra.mxu0 %v3848_v17  ;;  %3610 = vmatpush3.bf16.msra.mxu1 %v4225_v16  ;;  %v4436_v6 = vld [vmem:[%s4246_s24 + $0xc4] ss:$12 sps:$4 sm:$0xff]   ;;  %v3953_v11 = vld [vmem:[%s5120_s1 + $0xb8] sm:$0xff]   ;;  %v4488_v17 = vld [vmem:[%s4246_s24 + $0x108] ss:$12 sps:$4 sm:$0xff]  }
  0x2e   : > { %3057 = vmatprep.subr.bf16.mxu0 %v3849_v18  ;;  %3603 = vmatprep.subr.bf16.mxu1 %v4238_v19  ;;  %v3940_v8 = vld [vmem:[%s5120_s1 + $0xb0] sm:$0xff]   ;;  %v4462_v12 = vld [vmem:[%s4246_s24 + $0xd8] ss:$12 sps:$4 sm:$0xff]  }
  0x2f   : > { %v4472_v14 = vld [vmem:[%s4246_s24 + $0xf0] ss:$12 sps:$4 sm:$0xff]   ;;  %v4475_v15 = vld [vmem:[%s4246_s24 + $0x10c] ss:$12 sps:$4 sm:$0xff]  }
  0x30   : > { %v4491_v18 = vld [vmem:[%s4246_s24 + $0x124] ss:$12 sps:$4 sm:$0xff]  }
  0x31   : > { %3058 = vmatpush3.bf16.msra.mxu0 %v3851_v20  ;;  %3611 = vmatpush3.bf16.msra.mxu1 %v4238_v19  ;;  %v4501_v20 = vld [vmem:[%s4246_s24 + $0x13c] ss:$12 sps:$4 sm:$0xff]  }
  0x32   : > { %3059 = vmatprep.subr.bf16.mxu0 %v3852_v21  ;;  %3604 = vmatprep.subr.bf16.mxu1 %v4255_v22  ;;  %v4508_v21 = vld [vmem:[%s4246_s24 + $0x138] ss:$12 sps:$4 sm:$0xff]  }
  0x35   : > { %3060 = vmatpush3.bf16.msra.mxu0 %v3854_v25  ;;  %3612 = vmatpush3.bf16.msra.mxu1 %v4255_v22  ;;  %v4521_v25 = vld [vmem:[%s4246_s24 + $0x16c] ss:$12 sps:$4 sm:$0xff]  }
  0x36   : > { %3453 = vmatprep.subr.bf16.mxu0 %v4159_v1  ;;  %3181 = vmatprep.subr.bf16.mxu1 %v3860_v26  ;;  %v4528_v26 = vld [vmem:[%s4246_s24 + $0x168] ss:$12 sps:$4 sm:$0xff]  }
  0x38   : > { %854 = vmatmul.mubr.bf16.vlgmr.msra.gmra.mrb[0].mxu0 %v4274_v27  ;;  %3486 = vmatmul.mubr.bf16.vlgmr.msra.gmra.mrb[0].mxu1 %v4278_v28 }
  0x39   : > { %3454 = vmatpush3.bf16.msra.mxu0 %v4159_v1  ;;  %3182 = vmatpush3.bf16.msra.mxu1 %v3861_v29  ;;  %v4417_v1 = vld [vmem:[%s4246_s24 + $0xac] ss:$12 sps:$4 sm:$0xff]  }
  0x3a   : > { %3183 = vmatprep.subr.bf16.mxu1 %v3862_v30  ;;  %861 = vmatprep.mubr.bf16.mxu0 %v4289_v31  ;;  %v4538_v29 = vld [vmem:[%s4246_s24 + $0x180] ss:$12 sps:$4 sm:$0xff]  }
  0x3b   : > { %3489 = vmatprep.mubr.bf16.mxu1 %v4292_v32  ;;  %3455 = vmatprep.subr.bf16.mxu0 %v4172_v4  ;;  %v3936_v30 = vld [vmem:[%s4246_s24 + $0x20] ss:$12 sps:$4 sm:$0xff]  }
  0x3d   : > { %3184 = vmatpush3.bf16.msra.mxu1 %v3863_v33  ;;  %3456 = vmatpush3.bf16.msra.mxu0 %v4172_v4  ;;  %v3925_v4 = vld [vmem:[%s5120_s1 + $0xa0] sm:$0xff]  }
  0x3e   : > { %3185 = vmatprep.subr.bf16.mxu1 %v3869_v35  ;;  %3457 = vmatprep.subr.bf16.mxu0 %v4184_v7  ;;  %v3937_v33 = vld [vmem:[%s4246_s24 + $0x38] ss:$12 sps:$4 sm:$0xff]  }
  0x3f   : > { %v3939_v35 = vld [vmem:[%s5120_s1 + $0x180] sm:$0xff]  }
  0x40   : > { %862 = vmatmul.mubr.bf16.gmra.mrb[4].mxu0 %v4302_v34  ;;  %3490 = vmatmul.mubr.bf16.gmra.mrb[4].mxu1 %v4309_v36 }
  0x41   : > { %3186 = vmatpush3.bf16.msra.mxu1 %v3870_v37  ;;  %869 = vmatprep.mubr.bf16.mxu0 %v4319_v39  ;;  %v3943_v37 = vld [vmem:[%s4246_s24 + $0x50] ss:$12 sps:$4 sm:$0xff]  }
  0x42   : > { %3187 = vmatprep.subr.bf16.mxu1 %v3871_v38  ;;  %3493 = vmatprep.mubr.bf16.mxu1 %v4323_v40  ;;  %v3941_v38 = vld [vmem:[%s5120_s1 + $0x1c8] sm:$0xff]  }
  0x43   : > { %3458 = vmatpush3.bf16.msra.mxu0 %v4184_v7  ;;  %v3932_v7 = vld [vmem:[%s5120_s1 + $0xa8] sm:$0xff]  }
  0x44   : > { %3459 = vmatprep.subr.bf16.mxu0 %v4197_v10 }
  0x45   : > { %3188 = vmatpush3.bf16.msra.mxu1 %v3872_v41  ;;  %v3942_v41 = vld [vmem:[%s5120_s1 + $0x188] sm:$0xff]  }
  0x46   : > { %3189 = vmatprep.subr.bf16.mxu1 %v3878_v44  ;;  %v3945_v44 = vld [vmem:[%s5120_s1 + $0x1d0] sm:$0xff]  }
  0x47   : > { %3460 = vmatpush3.bf16.msra.mxu0 %v4197_v10  ;;  %v4452_v10 = vld [vmem:[%s4246_s24 + $0xdc] ss:$12 sps:$4 sm:$0xff]  }
  0x48   : > { %870 = vmatmul.mubr.bf16.gmra.mrb[8].mxu0 %v4334_v42  ;;  %3494 = vmatmul.mubr.bf16.gmra.mrb[8].mxu1 %v4337_v43 }
  0x49   : > { %3190 = vmatpush3.bf16.msra.mxu1 %v3879_v45  ;;  %877 = vmatprep.mubr.bf16.mxu0 %v4351_v47  ;;  %v3944_v45 = vld [vmem:[%s4246_s24 + $0x68] ss:$12 sps:$4 sm:$0xff]  }
  0x4a   : > { %3191 = vmatprep.subr.bf16.mxu1 %v3880_v46  ;;  %3497 = vmatprep.mubr.bf16.mxu1 %v4354_v48  ;;  %v3946_v46 = vld [vmem:[%s5120_s1 + $0x190] sm:$0xff]  }
  0x4b   : > { %3461 = vmatprep.subr.bf16.mxu0 %v4211_v13 }
  0x4c   : > { %3462 = vmatpush3.bf16.msra.mxu0 %v4211_v13  ;;  %v4465_v13 = vld [vmem:[%s4246_s24 + $0xf4] ss:$12 sps:$4 sm:$0xff]  }
  0x4d   : > { %3192 = vmatpush3.bf16.msra.mxu1 %v3881_v49  ;;  %3463 = vmatprep.subr.bf16.mxu0 %v4225_v16  ;;  %v3949_v49 = vld [vmem:[%s4246_s24 + $0x80] ss:$12 sps:$4 sm:$0xff]  }
  0x4e   : > { %3193 = vmatprep.subr.bf16.mxu1 %v3887_v50  ;;  %v3947_v50 = vld [vmem:[%s5120_s1 + $0x1d8] sm:$0xff]  }
  0x50   : > { %878 = vmatmul.mubr.bf16.gmra.mrb[12].mxu0 %v4368_v51  ;;  %3498 = vmatmul.mubr.bf16.gmra.mrb[12].mxu1 %v3886_v52  ;;  %v3948_v52 = vld [vmem:[%s5120_s1 + $0x198] sm:$0xff]  }
  0x51   : > { %3194 = vmatpush3.bf16.msra.mxu1 %v3888_v53  ;;  %885 = vmatprep.mubr.bf16.mxu0 %v4380_v55  ;;  %v3951_v53 = vld [vmem:[%s5120_s1 + $0x1e0] sm:$0xff]  }
  0x52   : > { %3195 = vmatprep.subr.bf16.mxu1 %v3889_v54  ;;  %1335 = vmatprep.mubr.bf16.mxu1 %v3895_v56  ;;  %v3950_v54 = vld [vmem:[%s4246_s24 + $0x98] ss:$12 sps:$4 sm:$0xff]  }
  0x53   : > { %3464 = vmatpush3.bf16.msra.mxu0 %v4225_v16  ;;  %v4480_v16 = vld [vmem:[%s5120_s1 + $0x200] sm:$0xff]  }
  0x54   : > { %3465 = vmatprep.subr.bf16.mxu0 %v4238_v19  ;;  %v3952_v56 = vld [vmem:[%s5120_s1 + $0x1a0] sm:$0xff]  }
  0x55   : > { %3196 = vmatpush3.bf16.msra.mxu1 %v3890_v57  ;;  %v3956_v57 = vld [vmem:[%s4246_s24 + $0xb0] ss:$12 sps:$4 sm:$0xff]  }
  0x56   : > { %3501 = vmatprep.subr.bf16.mxu1 %v3897_v58 }
  0x57   : > { %3466 = vmatpush3.bf16.msra.mxu0 %v4238_v19  ;;  %v4498_v19 = vld [vmem:[%s4246_s24 + $0x120] ss:$12 sps:$4 sm:$0xff]  }
  0x58   : > { %886 = vmatmul.mubr.bf16.gmra.mrb[16].mxu0 %v4395_v60  ;;  %1336 = vmatmul.mubr.bf16.vlgmr.msra.gmra.mrb[16].mxu1 %v3893_v59  ;;  %v3955_v59 = vld [vmem:[%s5120_s1 + $0x1a8] sm:$0xff]  }
  0x59   : > { %3502 = vmatpush3.bf16.msra.mxu1 %v3897_v58  ;;  %893 = vmatprep.mubr.bf16.mxu0 %v4399_v61  ;;  %v3954_v58 = vld [vmem:[%s5120_s1 + $0x1e8] sm:$0xff]  }
  0x5a   : > { %1343 = vmatprep.mubr.bf16.mxu1 %v4259_v23  ;;  %3503 = vmatprep.subr.bf16.mxu1 %v3904_v62  ;;  %v4518_v23 = vld [vmem:[%s4246_s24 + $0x150] ss:$12 sps:$4 sm:$0xff]  }
  0x5b   : > { %3467 = vmatprep.subr.bf16.mxu0 %v4255_v22 }
  0x5c   : > { %3468 = vmatpush3.bf16.msra.mxu0 %v4255_v22  ;;  %v4511_v22 = vld [vmem:[%s4246_s24 + $0x154] ss:$12 sps:$4 sm:$0xff]  }
  0x5d   : > { %3504 = vmatpush3.bf16.msra.mxu1 %v3904_v62  ;;  %3317 = vmatprep.subr.bf16.mxu0 %v3938_v5  ;;  %v3958_v62 = vld [vmem:[%s5120_s1 + $0x1f0] sm:$0xff]   ;;  %v3960_v5 = vld [vmem:[%s5120_s1 + $0x1f8] sm:$0xff]  }
  0x5e   : > { %3505 = vmatprep.subr.bf16.mxu1 %v3911_v63 }
  0x60   : > { %894 = vmatmul.mubr.bf16.gmra.mrb[20].mxu0 %v4413_v0  ;;  %1344 = vmatmul.mubr.bf16.gmra.mrb[20].mxu1 %v4274_v27  ;;  %v4531_v27 = vld [vmem:[%s4246_s24 + $0x184] ss:$12 sps:$4 sm:$0xff]  }
  0x61   : > { %901 = vmatprep.mubr.bf16.mxu0 %v4417_v1  ;;  %1351 = vmatprep.mubr.bf16.mxu1 %v4289_v31 }
  0x62   : > { %3506 = vmatpush3.bf16.msra.mxu1 %v3911_v63  ;;  %v3957_v63 = vld [vmem:[%s4246_s24 + $0xc8] ss:$12 sps:$4 sm:$0xff]  }
  0x63   : > { %3507 = vmatprep.subr.bf16.mxu1 %v3918_v2 }
  0x66   : > { %3508 = vmatpush3.bf16.msra.mxu1 %v3918_v2  ;;  %v3959_v2 = vld [vmem:[%s5120_s1 + $0x1b0] sm:$0xff]  }
  0x67   : > { %3509 = vmatprep.subr.bf16.mxu1 %v3925_v4 }
  0x68   : > { %902 = vmatmul.mubr.bf16.gmra.mrb[24].mxu0 %v4427_v3  ;;  %1352 = vmatmul.mubr.bf16.gmra.mrb[24].mxu1 %v4302_v34 }
  0x69   : > { %909 = vmatprep.mubr.bf16.mxu0 %v4436_v6  ;;  %1359 = vmatprep.mubr.bf16.mxu1 %v4319_v39 }
  0x6a   : > { %3510 = vmatpush3.bf16.msra.mxu1 %v3925_v4  ;;  %v3962_v4 = vld [vmem:[%s4246_s24 + $0x8] ss:$12 sps:$4 sm:$0xff]  }
  0x6b   : > { %3511 = vmatprep.subr.bf16.mxu1 %v3932_v7 }
  0x6e   : > { %3512 = vmatpush3.bf16.msra.mxu1 %v3932_v7  ;;  %v3961_v7 = vld [vmem:[%s5120_s1 + $0x1b8] sm:$0xff]  }
  0x6f   : > { %3513 = vmatprep.subr.bf16.mxu1 %v3940_v8 }
  0x70   : > { %910 = vmatmul.mubr.bf16.gmra.mrb[28].mxu0 %v4449_v9  ;;  %1360 = vmatmul.mubr.bf16.gmra.mrb[28].mxu1 %v4334_v42 }
  0x71   : > { %917 = vmatprep.mubr.bf16.mxu0 %v4452_v10  ;;  %1367 = vmatprep.mubr.bf16.mxu1 %v4351_v47 }
  0x72   : > { %3514 = vmatpush3.bf16.msra.mxu1 %v3940_v8  ;;  %v3964_v8 = vld [vmem:[%s5120_s1 + $0x208] sm:$0xff]  }
  0x73   : > { %3515 = vmatprep.subr.bf16.mxu1 %v3953_v11 }
  0x76   : > { %3516 = vmatpush3.bf16.msra.mxu1 %v3953_v11  ;;  %v3965_v11 = vld [vmem:[%s5120_s1 + $0x210] sm:$0xff]  }
  0x77   : > { %3549 = vmatprep.subr.bf16.mxu1 %v4480_v16 }
  0x78   : > { %918 = vmatmul.mubr.bf16.gmra.mrb[32].mxu0 %v4462_v12  ;;  %1368 = vmatmul.mubr.bf16.gmra.mrb[32].mxu1 %v4368_v51 }
  0x79   : > { %925 = vmatprep.mubr.bf16.mxu0 %v4465_v13  ;;  %1375 = vmatprep.mubr.bf16.mxu1 %v4380_v55 }
  0x80   : > { %926 = vmatmul.mubr.bf16.gmra.mrb[36].mxu0 %v4472_v14  ;;  %1376 = vmatmul.mubr.bf16.gmra.mrb[36].mxu1 %v4395_v60 }
  0x81   : > { %933 = vmatprep.mubr.bf16.mxu0 %v4475_v15  ;;  %1383 = vmatprep.mubr.bf16.mxu1 %v4399_v61 }
  0x88   : > { %934 = vmatmul.mubr.bf16.gmra.mrb[40].mxu0 %v4488_v17  ;;  %1384 = vmatmul.mubr.bf16.gmra.mrb[40].mxu1 %v4413_v0 }
  0x89   : > { %941 = vmatprep.mubr.bf16.mxu0 %v4491_v18  ;;  %1391 = vmatprep.mubr.bf16.mxu1 %v4417_v1 }
  0x90   : > { %942 = vmatmul.mubr.bf16.gmra.mrb[44].mxu0 %v4498_v19  ;;  %1392 = vmatmul.mubr.bf16.gmra.mrb[44].mxu1 %v4427_v3 }
  0x91   : > { %949 = vmatprep.mubr.bf16.mxu0 %v4501_v20  ;;  %1399 = vmatprep.mubr.bf16.mxu1 %v4436_v6 }
  0x98   : > { %950 = vmatmul.mubr.bf16.gmra.mrb[48].mxu0 %v4508_v21  ;;  %1400 = vmatmul.mubr.bf16.gmra.mrb[48].mxu1 %v4449_v9 }
  0x99   : > { %957 = vmatprep.mubr.bf16.mxu0 %v4511_v22  ;;  %1407 = vmatprep.mubr.bf16.mxu1 %v4452_v10 }
  0xa0   : > { %958 = vmatmul.mubr.bf16.gmra.mrb[52].mxu0 %v4518_v23  ;;  %1408 = vmatmul.mubr.bf16.gmra.mrb[52].mxu1 %v4462_v12 }
  0xa1   : > { %965 = vmatprep.mubr.bf16.mxu0 %v4521_v25  ;;  %1415 = vmatprep.mubr.bf16.mxu1 %v4465_v13 }
  0xa8   : > { %966 = vmatmul.mubr.bf16.gmra.mrb[56].mxu0 %v4528_v26  ;;  %1416 = vmatmul.mubr.bf16.gmra.mrb[56].mxu1 %v4472_v14 }
  0xa9   : > { %973 = vmatprep.mubr.bf16.mxu0 %v4531_v27  ;;  %1423 = vmatprep.mubr.bf16.mxu1 %v4475_v15 }
  0xb0   : > { %974 = vmatmul.mubr.bf16.gmra.mrb[60].mxu0 %v4538_v29  ;;  %1424 = vmatmul.mubr.bf16.gmra.mrb[60].mxu1 %v4488_v17 }
  0xb1   : > { %3469 = vmatprep.mubr.bf16.mxu0 %v3936_v30  ;;  %1431 = vmatprep.mubr.bf16.mxu1 %v4491_v18 }
  0xb8   : > { %3470 = vmatmul.mubr.bf16.vlgmr.msra.gmra.mrb[64].mxu0 %v3937_v33  ;;  %1432 = vmatmul.mubr.bf16.gmra.mrb[64].mxu1 %v4498_v19 }
  0xb9   : > { %3318 = vmatpush3.bf16.msra.mxu0 %v3939_v35  ;;  %3473 = vmatprep.mubr.bf16.mxu0 %v3943_v37 }
  0xba   : > { %3319 = vmatprep.subr.bf16.mxu0 %v3941_v38  ;;  %1439 = vmatprep.mubr.bf16.mxu1 %v4501_v20 }
  0xbd   : > { %3320 = vmatpush3.bf16.msra.mxu0 %v3942_v41 }
  0xbe   : > { %3321 = vmatprep.subr.bf16.mxu0 %v3945_v44  ;;  %v3977_v44 = vld [vmem:[%s4246_s24 + $0xc8] ss:$12 sps:$4 sm:$0xff]  }
  0xc0   : > { %3474 = vmatmul.mubr.bf16.gmra.mrb[68].mxu0 %v3944_v45  ;;  %1440 = vmatmul.mubr.bf16.gmra.mrb[68].mxu1 %v4508_v21 }
  0xc1   : > { %3322 = vmatpush3.bf16.msra.mxu0 %v3946_v46  ;;  %3477 = vmatprep.mubr.bf16.mxu0 %v3949_v49 }
  0xc2   : > { %3323 = vmatprep.subr.bf16.mxu0 %v3947_v50  ;;  %1447 = vmatprep.mubr.bf16.mxu1 %v4511_v22 }
  0xc5   : > { %3324 = vmatpush3.bf16.msra.mxu0 %v3948_v52  ;;  %v3978_v52 = vld [vmem:[%s4246_s24 + $0xe0] ss:$12 sps:$4 sm:$0xff]  }
  0xc6   : > { %3325 = vmatprep.subr.bf16.mxu0 %v3951_v53 }
  0xc8   : > { %3478 = vmatmul.mubr.bf16.gmra.mrb[72].mxu0 %v3950_v54  ;;  %1448 = vmatmul.mubr.bf16.gmra.mrb[72].mxu1 %v4518_v23 }
  0xc9   : > { %3326 = vmatpush3.bf16.msra.mxu0 %v3952_v56  ;;  %3481 = vmatprep.mubr.bf16.mxu0 %v3956_v57 }
  0xca   : > { %3327 = vmatprep.subr.bf16.mxu0 %v3954_v58  ;;  %1455 = vmatprep.mubr.bf16.mxu1 %v4521_v25  ;;  %v3979_v58 = vld [vmem:[%s4246_s24 + $0xf8] ss:$12 sps:$4 sm:$0xff]  }
  0xcd   : > { %3328 = vmatpush3.bf16.msra.mxu0 %v3955_v59 }
  0xce   : > { %3329 = vmatprep.subr.bf16.mxu0 %v3958_v62 }
  0xd0   : > { %3482 = vmatmul.mubr.bf16.gmra.mrb[76].mxu0 %v3957_v63  ;;  %1456 = vmatmul.mubr.bf16.gmra.mrb[76].mxu1 %v4528_v26 }
  0xd1   : > { %3330 = vmatpush3.bf16.msra.mxu0 %v3959_v2  ;;  %3517 = vmatprep.mubr.bf16.mxu1 %v3962_v4 }
  0xd2   : > { %3331 = vmatprep.subr.bf16.mxu0 %v3960_v5  ;;  %2170 = vmatprep.mubr.bf16.mxu0 %v4289_v31  ;;  %v3966_v31 = vld [vmem:[%s5120_s1 + $0x218] sm:$0xff]  }
  0xd5   : > { %3332 = vmatpush3.bf16.msra.mxu0 %v3961_v7  ;;  %v3980_v7 = vld [vmem:[%s4246_s24 + $0x110] ss:$12 sps:$4 sm:$0xff]  }
  0xd8   : > { %3518 = vmatmul.mubr.bf16.vlgmr.msra.gmra.mrb[80].mxu1 %v3936_v30  ;;  %2171 = vmatmul.mubr.bf16.vlgmr.msra.gmra.mrb[80].mxu0 %v4302_v34  ;;  %v3967_v34 = vld [vmem:[%s5120_s1 + $0x220] sm:$0xff]  }
  0xd9   : > { %3550 = vmatpush3.bf16.msra.mxu1 %v4480_v16  ;;  %3521 = vmatprep.mubr.bf16.mxu1 %v3937_v33  ;;  %v3975_v30 = vld [vmem:[%s4246_s24 + $0x98] ss:$12 sps:$4 sm:$0xff]  }
  0xda   : > { %2178 = vmatprep.mubr.bf16.mxu0 %v4319_v39  ;;  %3551 = vmatprep.subr.bf16.mxu1 %v3964_v8  ;;  %v3968_v39 = vld [vmem:[%s5120_s1 + $0x228] sm:$0xff]  }
  0xdd   : > { %3552 = vmatpush3.bf16.msra.mxu1 %v3964_v8 }
  0xde   : > { %3553 = vmatprep.subr.bf16.mxu1 %v3965_v11 }
  0xe0   : > { %3522 = vmatmul.mubr.bf16.gmra.mrb[84].mxu1 %v3943_v37  ;;  %2179 = vmatmul.mubr.bf16.gmra.mrb[84].mxu0 %v4334_v42  ;;  %v3969_v42 = vld [vmem:[%s5120_s1 + $0x230] sm:$0xff]  }
  0xe1   : > { %3525 = vmatprep.mubr.bf16.mxu1 %v3944_v45  ;;  %2186 = vmatprep.mubr.bf16.mxu0 %v4351_v47  ;;  %v3970_v47 = vld [vmem:[%s5120_s1 + $0x238] sm:$0xff]  }
  0xe2   : > { %3554 = vmatpush3.bf16.msra.mxu1 %v3965_v11  ;;  %v3976_v37 = vld [vmem:[%s4246_s24 + $0xb0] ss:$12 sps:$4 sm:$0xff]  }
  0xe3   : > { %3555 = vmatprep.subr.bf16.mxu1 %v3966_v31 }
  0xe6   : > { %3556 = vmatpush3.bf16.msra.mxu1 %v3966_v31 }
  0xe7   : > { %3557 = vmatprep.subr.bf16.mxu1 %v3967_v34 }
  0xe8   : > { %3526 = vmatmul.mubr.bf16.gmra.mrb[88].mxu1 %v3949_v49  ;;  %2187 = vmatmul.mubr.bf16.gmra.mrb[88].mxu0 %v4368_v51 }
  0xe9   : > { %3529 = vmatprep.mubr.bf16.mxu1 %v3950_v54  ;;  %2194 = vmatprep.mubr.bf16.mxu0 %v4380_v55  ;;  %v3971_v55 = vld [vmem:[%s4246_s24 + $0x38] ss:$12 sps:$4 sm:$0xff]  }
  0xea   : > { %3558 = vmatpush3.bf16.msra.mxu1 %v3967_v34 }
  0xeb   : > { %3559 = vmatprep.subr.bf16.mxu1 %v3968_v39 }
  0xee   : > { %3560 = vmatpush3.bf16.msra.mxu1 %v3968_v39  ;;  %v3981_v39 = vld [vmem:[%s4246_s24 + $0x128] ss:$12 sps:$4 sm:$0xff]  }
  0xef   : > { %3561 = vmatprep.subr.bf16.mxu1 %v3969_v42 }
  0xf0   : > { %3530 = vmatmul.mubr.bf16.gmra.mrb[92].mxu1 %v3956_v57  ;;  %2195 = vmatmul.mubr.bf16.gmra.mrb[92].mxu0 %v4395_v60 }
  0xf1   : > { %3533 = vmatprep.mubr.bf16.mxu1 %v3957_v63  ;;  %2202 = vmatprep.mubr.bf16.mxu0 %v4399_v61  ;;  %v3972_v61 = vld [vmem:[%s4246_s24 + $0x50] ss:$12 sps:$4 sm:$0xff]  }
  0xf2   : > { %3562 = vmatpush3.bf16.msra.mxu1 %v3969_v42 }
  0xf3   : > { %3563 = vmatprep.subr.bf16.mxu1 %v3970_v47 }
  0xf6   : > { %3564 = vmatpush3.bf16.msra.mxu1 %v3970_v47 }
  0xf8   : > { %3534 = vmatmul.mubr.bf16.gmra.mrb[0].mxu1 %v4262_v24  ;;  %2203 = vmatmul.mubr.bf16.gmra.mrb[96].mxu0 %v4413_v0 }
  0xf9   : > { %3537 = vmatprep.mubr.bf16.mxu1 %v4278_v28  ;;  %2210 = vmatprep.mubr.bf16.mxu0 %v4417_v1 }
 0x100   : > { %3538 = vmatmul.mubr.bf16.gmra.mrb[4].mxu1 %v4292_v32  ;;  %2211 = vmatmul.mubr.bf16.gmra.mrb[100].mxu0 %v4427_v3  ;;  %v3973_v3 = vld [vmem:[%s4246_s24 + $0x68] ss:$12 sps:$4 sm:$0xff]  }
 0x101   : > { %3541 = vmatprep.mubr.bf16.mxu1 %v4309_v36  ;;  %2218 = vmatprep.mubr.bf16.mxu0 %v4436_v6 }
 0x108   : > { %3542 = vmatmul.mubr.bf16.gmra.mrb[8].mxu1 %v4323_v40  ;;  %2219 = vmatmul.mubr.bf16.gmra.mrb[104].mxu0 %v4449_v9 }
 0x109   : > { %3545 = vmatprep.mubr.bf16.mxu1 %v4337_v43  ;;  %2226 = vmatprep.mubr.bf16.mxu0 %v4452_v10 }
 0x10b   : > { %v3061_v24 = vpop.f32.mrb[0].mxu0 }
 0x10c   : > { %v3062_v28 = vpop.f32.mrb[1].mxu0 }
 0x10d   : > { %v4647_v51 = vadd.f32 %v3062_v28, %v3061_v24  ;;  %v3064_v32 = vpop.f32.mrb[2].mxu0 }
 0x10e   : > { %v3065_v60 = vpop.f32.mrb[3].mxu0 }
 0x10f   : > { %v4650_v36 = vadd.f32 %v3065_v60, %v3064_v32  ;;  %v3982_v60 = vld [vmem:[%s4246_s24 + $0x140] ss:$12 sps:$4 sm:$0xff]  }
 0x110   : > { %3546 = vmatmul.mubr.bf16.gmra.mrb[12].mxu1 %v4354_v48  ;;  %2227 = vmatmul.mubr.bf16.gmra.mrb[108].mxu0 %v4462_v12  ;;  %v3974_v12 = vld [vmem:[%s4246_s24 + $0x80] ss:$12 sps:$4 sm:$0xff]  }
 0x111   : > { %2234 = vmatprep.mubr.bf16.mxu0 %v4465_v13  ;;  %3565 = vmatprep.mubr.bf16.mxu1 %v3971_v55 }
 0x113   : > { %v3067_v40 = vpop.f32.mrb[4].mxu0 }
 0x114   : > { %v3068_v43 = vpop.f32.mrb[5].mxu0 }
 0x115   : > { %v4656_v0 = vadd.f32 %v3068_v43, %v3067_v40  ;;  %v3070_v1 = vpop.f32.mrb[6].mxu0 }
 0x116   : > { %v3071_v6 = vpop.f32.mrb[7].mxu0 }
 0x117   : > { %v4659_v9 = vadd.f32 %v3071_v6, %v3070_v1 }
 0x118   : > { %2235 = vmatmul.mubr.bf16.gmra.mrb[112].mxu0 %v4472_v14  ;;  %3566 = vmatmul.mubr.bf16.vlgmr.msra.gmra.mrb[80].mxu1 %v3972_v61 }
 0x119   : > { %2242 = vmatprep.mubr.bf16.mxu0 %v4475_v15  ;;  %3569 = vmatprep.mubr.bf16.mxu1 %v3973_v3  ;;  %v3983_v3 = vld [vmem:[%s4246_s24 + $0x158] ss:$12 sps:$4 sm:$0xff]  }
 0x11b   : > { %v3073_v48 = vpop.f32.mrb[8].mxu0 }
 0x11c   : > { %v3074_v10 = vpop.f32.mrb[9].mxu0 }
 0x11d   : > { %v4664_v13 = vadd.f32 %v3074_v10, %v3073_v48  ;;  %v3076_v16 = vpop.f32.mrb[10].mxu0 }
 0x11e   : > { %v3077_v33 = vpop.f32.mrb[11].mxu0 }
 0x11f   : > { %v4667_v35 = vadd.f32 %v3077_v33, %v3076_v16  ;;  %v3984_v33 = vld [vmem:[%s4246_s24 + $0x170] ss:$12 sps:$4 sm:$0xff]  }
 0x120   : > { %2243 = vmatmul.mubr.bf16.gmra.mrb[116].mxu0 %v4488_v17  ;;  %3570 = vmatmul.mubr.bf16.gmra.mrb[84].mxu1 %v3974_v12 }
 0x121   : > { %2250 = vmatprep.mubr.bf16.mxu0 %v4491_v18  ;;  %3573 = vmatprep.mubr.bf16.mxu1 %v3975_v30 }
 0x123   : > { %v3079_v14 = vpop.f32.mrb[12].mxu0 }
 0x124   : > { %v3080_v15 = vpop.f32.mrb[13].mxu0 }
 0x125   : > { %v4672_v38 = vadd.f32 %v3080_v15, %v3079_v14  ;;  %v3082_v41 = vpop.f32.mrb[14].mxu0 }
 0x126   : > { %v3083_v45 = vpop.f32.mrb[15].mxu0 }
 0x127   : > { %v4675_v46 = vadd.f32 %v3083_v45, %v3082_v41  ;;  %v3987_v45 = vld [vmem:[%s4246_s24 + $0x188] ss:$12 sps:$4 sm:$0xff]  }
 0x128   : > { %2251 = vmatmul.mubr.bf16.gmra.mrb[120].mxu0 %v4498_v19  ;;  %3574 = vmatmul.mubr.bf16.gmra.mrb[88].mxu1 %v3976_v37 }
 0x129   : > { %2258 = vmatprep.mubr.bf16.mxu0 %v4501_v20  ;;  %3577 = vmatprep.mubr.bf16.mxu1 %v3977_v44  ;;  %v3985_v44 = vld [vmem:[%s4246_s24 + $0x19c] ss:$12 sps:$4 sm:$0xff]  }
 0x12b   : > { %v3085_v17 = vpop.f32.mrb[16].mxu0  ;;  %v3197_v18 = vpop.f32.mrb[16].mxu1 }
 0x12c   : > { %v3086_v49 = vpop.f32.mrb[17].mxu0  ;;  %v3198_v50 = vpop.f32.mrb[17].mxu1 }
 0x12d   : > { %v4680_v53 = vadd.f32 %v3086_v49, %v3085_v17  ;;  %v3088_v54 = vpop.f32.mrb[18].mxu0  ;;  %v4682_v56 = vadd.f32 %v3198_v50, %v3197_v18  ;;  %v3200_v57 = vpop.f32.mrb[18].mxu1 }
 0x12e   : > { %v3089_v59 = vpop.f32.mrb[19].mxu0  ;;  %v3201_v62 = vpop.f32.mrb[19].mxu1 }
 0x12f   : > { %v4685_v19 = vadd.f32 %v3089_v59, %v3088_v54  ;;  %v4687_v20 = vadd.f32 %v3201_v62, %v3200_v57  ;;  %v3988_v57 = vld [vmem:[%s4246_s24 + $0x198] ss:$12 sps:$4 sm:$0xff]  }
 0x130   : > { %2259 = vmatmul.mubr.bf16.gmra.mrb[124].mxu0 %v4508_v21  ;;  %3578 = vmatmul.mubr.bf16.gmra.mrb[92].mxu1 %v3978_v52 }
 0x131   : > { %2266 = vmatprep.mubr.bf16.mxu0 %v4511_v22  ;;  %3581 = vmatprep.mubr.bf16.mxu1 %v3979_v58  ;;  %v3989_v58 = vld [vmem:[%s4246_s24 + $0x1a0] ss:$12 sps:$4 sm:$0xff]   ;;  %s237_s24 = sand.u32 1, %s4052_s16  }
 0x132   : > { %s2768_s29 = sshll.u32 %s237_s24, 8  ;;  %s5073_s18 = scalar_lea.sflag [#allocation3], %s237_s24 }
 0x133   : > { %v3091_v63 = vpop.f32.mrb[20].mxu0  ;;  %v3203_v2 = vpop.f32.mrb[20].mxu1  ;;  %s4932_s30 = scalar_lea.vmem [#allocation2], %s2768_s29 }
 0x134   : > { %v3092_v4 = vpop.f32.mrb[21].mxu0  ;;  %v3204_v5 = vpop.f32.mrb[21].mxu1  ;;  %s2649_s6 = sshll.u32 %s4932_s30, 4  ;;  %s5067_s6 = int_to_ptr.vmem [resolvable:$true] %s2649_s6 }
 0x135   : > { %v4692_v8 = vadd.f32 %v3092_v4, %v3091_v63  ;;  %v3094_v11 = vpop.f32.mrb[22].mxu0  ;;  %v4694_v31 = vadd.f32 %v3204_v5, %v3203_v2  ;;  %v3206_v34 = vpop.f32.mrb[22].mxu1  ;;  %s3990_s10 = scalar_lea.vmem %s5067_s6, 4096  ;;  %p3997_p1 = scmp.lt.s32.totalorder %s5067_s6, %s3995_s12 }
 0x136   : > { %v3095_v42 = vpop.f32.mrb[23].mxu0  ;;  %v3207_v47 = vpop.f32.mrb[23].mxu1  ;;  %p3991_p12 = scmp.ne.s32.totalorder %s5067_s6, %s3990_s10  ;;  %p3998_p2 = scmp.lt.s32.totalorder %s3996_s13, %s3990_s10 }
 0x137   : > { %v4697_v21 = vadd.f32 %v3095_v42, %v3094_v11  ;;  %v4699_v22 = vadd.f32 %v3207_v47, %v3206_v34 }
 0x138   : > { %2267 = vmatmul.mubr.bf16.gmra.mrb[128].mxu0 %v4518_v23  ;;  %3582 = vmatmul.mubr.bf16.gmra.mrb[0].mxu1 %v3980_v7  ;;  %p3992_p13 = pnand %p3991_p12, %p4138_p4  ;;  %p3999_p3 = por %p3998_p2, %p3997_p1 }
 0x139   : > { %2274 = vmatprep.mubr.bf16.mxu0 %v4521_v25  ;;  %3585 = vmatprep.mubr.bf16.mxu1 %v3981_v39 }
 0x13a   : > { %p3993_p0 = pneg %p3992_p13 }
 0x13b   : > { %v3097_v24 = vpop.f32.mrb[24].mxu0  ;;  %v3209_v28 = vpop.f32.mrb[24].mxu1 }
 0x13c   : > { %v3098_v32 = vpop.f32.mrb[25].mxu0  ;;  %v3210_v55 = vpop.f32.mrb[25].mxu1  ;;  %p4000_p5 = pnand %p3999_p3, %p3993_p0 }
 0x13d   : > { %v4704_v40 = vadd.f32 %v3098_v32, %v3097_v24  ;;  %v3100_v43 = vpop.f32.mrb[26].mxu0  ;;  %v4706_v61 = vadd.f32 %v3210_v55, %v3209_v28  ;;  %v3212_v1 = vpop.f32.mrb[26].mxu1 }
 0x13e   : > { %v3101_v6 = vpop.f32.mrb[27].mxu0  ;;  %v3213_v48 = vpop.f32.mrb[27].mxu1 }
 0x13f   : > { %v4709_v23 = vadd.f32 %v3101_v6, %v3100_v43  ;;  %v4711_v25 = vadd.f32 %v3213_v48, %v3212_v1 }
 0x140   : > { %2275 = vmatmul.mubr.bf16.gmra.mrb[132].mxu0 %v4528_v26  ;;  %3586 = vmatmul.mubr.bf16.gmra.mrb[4].mxu1 %v3982_v60 }
 0x141   : > { %2282 = vmatprep.mubr.bf16.mxu0 %v4531_v27  ;;  %3589 = vmatprep.mubr.bf16.mxu1 %v3983_v3 }
 0x143   : > { %v3103_v10 = vpop.f32.mrb[28].mxu0  ;;  %v3215_v12 = vpop.f32.mrb[28].mxu1 }
 0x144   : > { %v3104_v16 = vpop.f32.mrb[29].mxu0  ;;  %v3216_v30 = vpop.f32.mrb[29].mxu1 }
 0x145   : > { %v4716_v14 = vadd.f32 %v3104_v16, %v3103_v10  ;;  %v3106_v15 = vpop.f32.mrb[30].mxu0  ;;  %v4718_v37 = vadd.f32 %v3216_v30, %v3215_v12  ;;  %v3218_v41 = vpop.f32.mrb[30].mxu1 }
 0x146   : > { %v3107_v26 = vpop.f32.mrb[31].mxu0  ;;  %v3219_v17 = vpop.f32.mrb[31].mxu1 }
 0x147   : > { %v4722_v18 = vadd.f32 %v3107_v26, %v3106_v15  ;;  %v4724_v27 = vadd.f32 %v3219_v17, %v3218_v41 }
 0x148   : > { %2283 = vmatmul.mubr.bf16.gmra.mrb[136].mxu0 %v4538_v29  ;;  %3590 = vmatmul.mubr.bf16.gmra.mrb[8].mxu1 %v3984_v33 }
 0x149   : > { %2290 = vmatprep.mubr.bf16.mxu0 %v3985_v44  ;;  %3593 = vmatprep.mubr.bf16.mxu1 %v3987_v45 }
 0x14b   : > { %v3109_v49 = vpop.f32.mrb[32].mxu0  ;;  %v3221_v50 = vpop.f32.mrb[32].mxu1 }
 0x14c   : > { %v3110_v52 = vpop.f32.mrb[33].mxu0  ;;  %v3222_v54 = vpop.f32.mrb[33].mxu1 }
 0x14d   : > { %v3111_v59 = vadd.f32 %v3110_v52, %v3109_v49  ;;  %v3112_v62 = vpop.f32.mrb[34].mxu0  ;;  %v4729_v63 = vadd.f32 %v3222_v54, %v3221_v50  ;;  %v3224_v2 = vpop.f32.mrb[34].mxu1 }
 0x14e   : > { %v3113_v4 = vpop.f32.mrb[35].mxu0  ;;  %v3225_v5 = vpop.f32.mrb[35].mxu1 }
 0x14f   : > { %v3114_v7 = vadd.f32 %v3113_v4, %v3112_v62  ;;  %v4731_v11 = vadd.f32 %v3225_v5, %v3224_v2 }
 0x150   : > { %2291 = vmatmul.mubr.bf16.gmra.mrb[140].mxu0 %v3988_v57  ;;  %3594 = vmatmul.mubr.bf16.gmra.mrb[12].mxu1 %v3989_v58 }
 0x153   : > { %v3115_v29 = vpop.f32.mrb[36].mxu0  ;;  %v3227_v34 = vpop.f32.mrb[36].mxu1 }
 0x154   : > { %v3116_v39 = vpop.f32.mrb[37].mxu0  ;;  %v3228_v42 = vpop.f32.mrb[37].mxu1 }
 0x155   : > { %v3117_v47 = vadd.f32 %v3116_v39, %v3115_v29  ;;  %v3118_v24 = vpop.f32.mrb[38].mxu0  ;;  %v4733_v28 = vadd.f32 %v3228_v42, %v3227_v34  ;;  %v3230_v32 = vpop.f32.mrb[38].mxu1 }
 0x156   : > { %v3119_v55 = vpop.f32.mrb[39].mxu0  ;;  %v3231_v60 = vpop.f32.mrb[39].mxu1 }
 0x157   : > { %v3120_v43 = vadd.f32 %v3119_v55, %v3118_v24  ;;  %v4735_v1 = vadd.f32 %v3231_v60, %v3230_v32 }
 0x15b   : > { %v3121_v3 = vpop.f32.mrb[40].mxu0  ;;  %v3233_v6 = vpop.f32.mrb[40].mxu1 }
 0x15c   : > { %v3122_v48 = vpop.f32.mrb[41].mxu0  ;;  %v3234_v10 = vpop.f32.mrb[41].mxu1 }
 0x15d   : > { %v3123_v12 = vadd.f32 %v3122_v48, %v3121_v3  ;;  %v3124_v16 = vpop.f32.mrb[42].mxu0  ;;  %v4737_v30 = vadd.f32 %v3234_v10, %v3233_v6  ;;  %v3236_v33 = vpop.f32.mrb[42].mxu1 }
 0x15e   : > { %v3125_v15 = vpop.f32.mrb[43].mxu0  ;;  %v3237_v41 = vpop.f32.mrb[43].mxu1 }
 0x15f   : > { %v3126_v44 = vadd.f32 %v3125_v15, %v3124_v16  ;;  %v4739_v45 = vadd.f32 %v3237_v41, %v3236_v33 }
 0x163   : > { %v3127_v26 = vpop.f32.mrb[44].mxu0  ;;  %v3239_v17 = vpop.f32.mrb[44].mxu1 }
 0x164   : > { %v3128_v49 = vpop.f32.mrb[45].mxu0  ;;  %v3240_v50 = vpop.f32.mrb[45].mxu1 }
 0x165   : > { %v3129_v52 = vadd.f32 %v3128_v49, %v3127_v26  ;;  %v3130_v54 = vpop.f32.mrb[46].mxu0  ;;  %v4741_v57 = vadd.f32 %v3240_v50, %v3239_v17  ;;  %v3242_v58 = vpop.f32.mrb[46].mxu1 }
 0x166   : > { %v3131_v62 = vpop.f32.mrb[47].mxu0  ;;  %v3243_v2 = vpop.f32.mrb[47].mxu1 }
 0x167   : > { %v3132_v4 = vadd.f32 %v3131_v62, %v3130_v54  ;;  %v4743_v5 = vadd.f32 %v3243_v2, %v3242_v58 }
 0x16b   : > { %v3133_v29 = vpop.f32.mrb[48].mxu0  ;;  %v3245_v34 = vpop.f32.mrb[48].mxu1 }
 0x16c   : > { %v3134_v39 = vpop.f32.mrb[49].mxu0  ;;  %v3246_v42 = vpop.f32.mrb[49].mxu1 }
 0x16d   : > { %v4745_v24 = vadd.f32 %v3134_v39, %v3133_v29  ;;  %v3247_v32 = vadd.f32 %v3246_v42, %v3245_v34  ;;  %v3136_v55 = vpop.f32.mrb[50].mxu0  ;;  %v3248_v60 = vpop.f32.mrb[50].mxu1 }
 0x16e   : > { %v3137_v3 = vpop.f32.mrb[51].mxu0  ;;  %v3249_v6 = vpop.f32.mrb[51].mxu1 }
 0x16f   : > { %v4747_v48 = vadd.f32 %v3247_v32, %v3111_v59  ;;  %v4749_v10 = vadd.f32 %v3137_v3, %v3136_v55  ;;  %v3250_v16 = vadd.f32 %v3249_v6, %v3248_v60 }
 0x171   : > { %v4751_v33 = vadd.f32 %v3250_v16, %v3114_v7 }
 0x173   : > { %v3139_v15 = vpop.f32.mrb[52].mxu0  ;;  %v3251_v41 = vpop.f32.mrb[52].mxu1 }
 0x174   : > { %v3140_v26 = vpop.f32.mrb[53].mxu0  ;;  %v3252_v17 = vpop.f32.mrb[53].mxu1 }
 0x175   : > { %v4753_v49 = vadd.f32 %v3140_v26, %v3139_v15  ;;  %v3253_v50 = vadd.f32 %v3252_v17, %v3251_v41  ;;  %v3142_v54 = vpop.f32.mrb[54].mxu0  ;;  %v3254_v58 = vpop.f32.mrb[54].mxu1 }
 0x176   : > { %v3143_v62 = vpop.f32.mrb[55].mxu0  ;;  %v3255_v2 = vpop.f32.mrb[55].mxu1 }
 0x177   : > { %v4755_v29 = vadd.f32 %v3253_v50, %v3117_v47  ;;  %v4757_v59 = vadd.f32 %v3143_v62, %v3142_v54  ;;  %v3256_v34 = vadd.f32 %v3255_v2, %v3254_v58 }
 0x179   : > { %v4759_v39 = vadd.f32 %v3256_v34, %v3120_v43 }
 0x17b   : > { %5126 = vst [vmem:[#allocation5_spill] sm:$0xff] %v4759_v39  ;;  %v3145_v7 = vpop.f32.mrb[56].mxu0  ;;  %v3257_v42 = vpop.f32.mrb[56].mxu1 }
 0x17c   : > { %v3146_v32 = vpop.f32.mrb[57].mxu0  ;;  %v3258_v55 = vpop.f32.mrb[57].mxu1 }
 0x17d   : > { %v4761_v60 = vadd.f32 %v3146_v32, %v3145_v7  ;;  %v3259_v3 = vadd.f32 %v3258_v55, %v3257_v42  ;;  %v3148_v6 = vpop.f32.mrb[58].mxu0  ;;  %v3260_v16 = vpop.f32.mrb[58].mxu1 }
 0x17e   : > { %v3149_v15 = vpop.f32.mrb[59].mxu0  ;;  %v3261_v41 = vpop.f32.mrb[59].mxu1 }
 0x17f   : > { %v4763_v26 = vadd.f32 %v3259_v3, %v3123_v12  ;;  %v4765_v47 = vadd.f32 %v3149_v15, %v3148_v6  ;;  %v3262_v17 = vadd.f32 %v3261_v41, %v3260_v16 }
 0x181   : > { %v4767_v50 = vadd.f32 %v3262_v17, %v3126_v44 }
 0x183   : > { %5127 = vst [vmem:[#allocation6_spill] sm:$0xff] %v4767_v50  ;;  %v3151_v43 = vpop.f32.mrb[60].mxu0  ;;  %v3263_v54 = vpop.f32.mrb[60].mxu1 }
 0x184   : > { %v3152_v58 = vpop.f32.mrb[61].mxu0  ;;  %v3264_v62 = vpop.f32.mrb[61].mxu1 }
 0x185   : > { %v4769_v2 = vadd.f32 %v3152_v58, %v3151_v43  ;;  %v3265_v34 = vadd.f32 %v3264_v62, %v3263_v54  ;;  %v3154_v7 = vpop.f32.mrb[62].mxu0  ;;  %v3266_v42 = vpop.f32.mrb[62].mxu1 }
 0x186   : > { %v3155_v32 = vpop.f32.mrb[63].mxu0  ;;  %v3267_v55 = vpop.f32.mrb[63].mxu1 }
 0x187   : > { %v4771_v39 = vadd.f32 %v3265_v34, %v3129_v52  ;;  %v4773_v12 = vadd.f32 %v3155_v32, %v3154_v7  ;;  %v3268_v3 = vadd.f32 %v3267_v55, %v3266_v42 }
 0x189   : > { %v4775_v6 = vadd.f32 %v3268_v3, %v3132_v4 }
 0x18b   : > { %v3471_v44 = vpop.f32.mrb[64].mxu0  ;;  %v3269_v16 = vpop.f32.mrb[64].mxu1 }
 0x18c   : > { %v1025_v15 = vadd.f32 %v3471_v44, %v4656_v0  ;;  %v1016_v41 = vpop.f32.mrb[65].mxu0  ;;  %v3270_v17 = vpop.f32.mrb[65].mxu1 }
 0x18d   : > { %v1017_v43 = vadd.f32 %v4647_v51, %v1016_v41  ;;  %v3271_v54 = vadd.f32 %v3270_v17, %v3269_v16  ;;  %v3472_v58 = vpop.f32.mrb[66].mxu0  ;;  %v3272_v62 = vpop.f32.mrb[66].mxu1 }
 0x18e   : > { %v4780_v50 = vadd.f32 %v4694_v31, %v1025_v15  ;;  %v1028_v52 = vadd.f32 %v3472_v58, %v4659_v9  ;;  %v1019_v34 = vpop.f32.mrb[67].mxu0  ;;  %v3273_v7 = vpop.f32.mrb[67].mxu1 }
 0x18f   : > { %v4784_v4 = vadd.f32 %v4682_v56, %v1017_v43  ;;  %v4787_v42 = vadd.f32 %v3271_v54, %v4745_v24  ;;  %v1020_v0 = vadd.f32 %v4650_v36, %v1019_v34  ;;  %v3274_v32 = vadd.f32 %v3273_v7, %v3272_v62 }
 0x190   : > { %v4791_v51 = vadd.f32 %v4699_v22, %v1028_v52 }
 0x191   : > { %v4794_v55 = vadd.f32 %v4687_v20, %v1020_v0  ;;  %v4797_v31 = vadd.f32 %v3274_v32, %v4749_v10 }
 0x193   : > { %v3475_v9 = vpop.f32.mrb[68].mxu0  ;;  %v3275_v3 = vpop.f32.mrb[68].mxu1 }
 0x194   : > { %v1041_v56 = vadd.f32 %v3475_v9, %v4672_v38  ;;  %v1032_v44 = vpop.f32.mrb[69].mxu0  ;;  %v3276_v16 = vpop.f32.mrb[69].mxu1 }
 0x195   : > { %v1033_v24 = vadd.f32 %v4664_v13, %v1032_v44  ;;  %v3277_v15 = vadd.f32 %v3276_v16, %v3275_v3  ;;  %v3476_v36 = vpop.f32.mrb[70].mxu0  ;;  %v3278_v41 = vpop.f32.mrb[70].mxu1 }
 0x196   : > { %v4802_v22 = vadd.f32 %v4718_v37, %v1041_v56  ;;  %v1044_v20 = vadd.f32 %v3476_v36, %v4675_v46  ;;  %v1035_v17 = vpop.f32.mrb[71].mxu0  ;;  %v3279_v43 = vpop.f32.mrb[71].mxu1 }
 0x197   : > { %v4806_v10 = vadd.f32 %v4706_v61, %v1033_v24  ;;  %v4809_v54 = vadd.f32 %v3277_v15, %v4753_v49  ;;  %v1036_v38 = vadd.f32 %v4667_v35, %v1035_v17  ;;  %v3280_v58 = vadd.f32 %v3279_v43, %v3278_v41 }
 0x198   : > { %v4813_v13 = vadd.f32 %v4724_v27, %v1044_v20 }
 0x199   : > { %v4816_v62 = vadd.f32 %v4711_v25, %v1036_v38  ;;  %v4819_v37 = vadd.f32 %v3280_v58, %v4757_v59 }
 0x19b   : > { %v3479_v46 = vpop.f32.mrb[72].mxu0  ;;  %v3281_v52 = vpop.f32.mrb[72].mxu1 }
 0x19c   : > { %v1057_v61 = vadd.f32 %v3479_v46, %v4692_v8  ;;  %v1048_v34 = vpop.f32.mrb[73].mxu0  ;;  %v3282_v7 = vpop.f32.mrb[73].mxu1 }
 0x19d   : > { %v1049_v49 = vadd.f32 %v4680_v53, %v1048_v34  ;;  %v3283_v0 = vadd.f32 %v3282_v7, %v3281_v52  ;;  %v3480_v35 = vpop.f32.mrb[74].mxu0  ;;  %v3284_v32 = vpop.f32.mrb[74].mxu1 }
 0x19e   : > { %v4824_v27 = vadd.f32 %v4733_v28, %v1057_v61  ;;  %v1060_v25 = vadd.f32 %v3480_v35, %v4697_v21  ;;  %v1051_v9 = vpop.f32.mrb[75].mxu0  ;;  %v3285_v3 = vpop.f32.mrb[75].mxu1 }
 0x19f   : > { %v4828_v59 = vadd.f32 %v4729_v63, %v1049_v49  ;;  %v4831_v56 = vadd.f32 %v3283_v0, %v4761_v60  ;;  %v1052_v8 = vadd.f32 %v4685_v19, %v1051_v9  ;;  %v3286_v44 = vadd.f32 %v3285_v3, %v3284_v32 }
 0x1a0   : > { %v4835_v53 = vadd.f32 %v4735_v1, %v1060_v25 }
 0x1a1   : > { %v1373_v16 = vadd.f32 %v4731_v11, %v1052_v8  ;;  %v4839_v28 = vadd.f32 %v3286_v44, %v4765_v47 }
 0x1a3   : > { %v3483_v21 = vpop.f32.mrb[76].mxu0  ;;  %v3287_v24 = vpop.f32.mrb[76].mxu1 }
 0x1a4   : > { %v1073_v15 = vadd.f32 %v3483_v21, %v4716_v14  ;;  %v1064_v63 = vpop.f32.mrb[77].mxu0  ;;  %v3288_v36 = vpop.f32.mrb[77].mxu1 }
 0x1a5   : > { %v1065_v60 = vadd.f32 %v4704_v40, %v1064_v63  ;;  %v3289_v41 = vadd.f32 %v3288_v36, %v3287_v24  ;;  %v3484_v20 = vpop.f32.mrb[78].mxu0  ;;  %v3290_v19 = vpop.f32.mrb[78].mxu1 }
 0x1a6   : > { %v4844_v17 = vadd.f32 %v4741_v57, %v1073_v15  ;;  %v1076_v1 = vadd.f32 %v3484_v20, %v4722_v18  ;;  %v1067_v11 = vpop.f32.mrb[79].mxu0  ;;  %v3291_v43 = vpop.f32.mrb[79].mxu1 }
 0x1a7   : > { %v1386_v47 = vadd.f32 %v4737_v30, %v1065_v60  ;;  %v4849_v38 = vadd.f32 %v3289_v41, %v4769_v2  ;;  %v1068_v14 = vadd.f32 %v4709_v23, %v1067_v11  ;;  %v3292_v58 = vadd.f32 %v3291_v43, %v3290_v19 }
 0x1a8   : > { %v4853_v40 = vadd.f32 %v4743_v5, %v1076_v1 }
 0x1a9   : > { %v1389_v46 = vadd.f32 %v4739_v45, %v1068_v14  ;;  %v4857_v57 = vadd.f32 %v3292_v58, %v4773_v12 }
 0x1ab   : > { %v3333_v52 = vpop.f32.mrb[80].mxu0 }
 0x1ac   : > { %v3334_v18 = vpop.f32.mrb[81].mxu0 }
 0x1ad   : > { %v3335_v61 = vadd.f32 %v3334_v18, %v3333_v52  ;;  %v3336_v34 = vpop.f32.mrb[82].mxu0 }
 0x1ae   : > { %v3337_v7 = vpop.f32.mrb[83].mxu0 }
 0x1af   : > { %v3338_v30 = vadd.f32 %v3337_v7, %v3336_v34  ;;  %v4860_v2 = vadd.f32 %v3335_v61, %v4784_v4 }
 0x1b1   : > { %v4863_v23 = vadd.f32 %v3338_v30, %v4794_v55 }
 0x1b3   : > { %v3339_v49 = vpop.f32.mrb[84].mxu0 }
 0x1b4   : > { %v3340_v5 = vpop.f32.mrb[85].mxu0 }
 0x1b5   : > { %v3341_v0 = vadd.f32 %v3340_v5, %v3339_v49  ;;  %v3342_v35 = vpop.f32.mrb[86].mxu0 }
 0x1b6   : > { %v3343_v45 = vpop.f32.mrb[87].mxu0 }
 0x1b7   : > { %v3344_v32 = vadd.f32 %v3343_v45, %v3342_v35  ;;  %v3615_v12 = vadd.f32 %v3341_v0, %v4780_v50 }
 0x1b9   : > { %v4867_v25 = vadd.f32 %v3344_v32, %v4791_v51 }
 0x1bb   : > { %v3345_v9 = vpop.f32.mrb[88].mxu0 }
 0x1bc   : > { %v3346_v3 = vpop.f32.mrb[89].mxu0 }
 0x1bd   : > { %v3347_v8 = vadd.f32 %v3346_v3, %v3345_v9  ;;  %v3348_v44 = vpop.f32.mrb[90].mxu0 }
 0x1be   : > { %v3349_v4 = vpop.f32.mrb[91].mxu0 }
 0x1bf   : > { %v3350_v21 = vadd.f32 %v3349_v4, %v3348_v44  ;;  %v4870_v55 = vadd.f32 %v3347_v8, %v4806_v10 }
 0x1c1   : > { %v4873_v24 = vadd.f32 %v3350_v21, %v4816_v62 }
 0x1c3   : > { %v3351_v15 = vpop.f32.mrb[92].mxu0 }
 0x1c4   : > { %v3352_v63 = vpop.f32.mrb[93].mxu0 }
 0x1c5   : > { %v3353_v36 = vadd.f32 %v3352_v63, %v3351_v15  ;;  %v3354_v60 = vpop.f32.mrb[94].mxu0 }
 0x1c6   : > { %v3355_v50 = vpop.f32.mrb[95].mxu0 }
 0x1c7   : > { %v3356_v41 = vadd.f32 %v3355_v50, %v3354_v60  ;;  %v4876_v51 = vadd.f32 %v3353_v36, %v4802_v22  ;;  %v4911_v50 = vld [vmem:[%s5122_s3] ss:$0 sm:$0xff] }
 0x1c9   : > { %v4879_v20 = vadd.f32 %v3356_v41, %v4813_v13 }
 0x1cb   : > { %v3357_v19 = vpop.f32.mrb[96].mxu0 }
 0x1cc   : > { %v3358_v1 = vpop.f32.mrb[97].mxu0 }
 0x1cd   : > { %v3359_v11 = vadd.f32 %v3358_v1, %v3357_v19  ;;  %v3360_v10 = vpop.f32.mrb[98].mxu0 }
 0x1ce   : > { %v3361_v43 = vpop.f32.mrb[99].mxu0 }
 0x1cf   : > { %v3362_v14 = vadd.f32 %v3361_v43, %v3360_v10  ;;  %v4882_v62 = vadd.f32 %v3359_v11, %v4828_v59 }
 0x1d1   : > { %v4884_v58 = vadd.f32 %v3362_v14, %v1373_v16 }
 0x1d3   : > { %v3363_v52 = vpop.f32.mrb[100].mxu0 }
 0x1d4   : > { %v3364_v18 = vpop.f32.mrb[101].mxu0 }
 0x1d5   : > { %v3365_v61 = vadd.f32 %v3364_v18, %v3363_v52  ;;  %v3366_v34 = vpop.f32.mrb[102].mxu0 }
 0x1d6   : > { %v3367_v22 = vpop.f32.mrb[103].mxu0 }
 0x1d7   : > { %v3368_v7 = vadd.f32 %v3367_v22, %v3366_v34  ;;  %v4887_v13 = vadd.f32 %v3365_v61, %v4824_v27 }
 0x1d9   : > { %v4890_v30 = vadd.f32 %v3368_v7, %v4835_v53 }
 0x1db   : > { %v3369_v49 = vpop.f32.mrb[104].mxu0 }
 0x1dc   : > { %v3370_v5 = vpop.f32.mrb[105].mxu0 }
 0x1dd   : > { %v3371_v0 = vadd.f32 %v3370_v5, %v3369_v49  ;;  %v3372_v59 = vpop.f32.mrb[106].mxu0 }
 0x1de   : > { %v3373_v35 = vpop.f32.mrb[107].mxu0 }
 0x1df   : > { %v3374_v16 = vadd.f32 %v3373_v35, %v3372_v59  ;;  %v4892_v45 = vadd.f32 %v3371_v0, %v1386_v47  ;;  %v4906_v47 = vld [vmem:[%s5121_s2] ss:$0 sm:$0xff] }
 0x1e1   : > { %v4894_v32 = vadd.f32 %v3374_v16, %v1389_v46 }
 0x1e3   : > { %v3375_v9 = vpop.f32.mrb[108].mxu0 }
 0x1e4   : > { %v3376_v3 = vpop.f32.mrb[109].mxu0 }
 0x1e5   : > { %v3377_v8 = vadd.f32 %v3376_v3, %v3375_v9  ;;  %v3378_v44 = vpop.f32.mrb[110].mxu0 }
 0x1e6   : > { %v3379_v27 = vpop.f32.mrb[111].mxu0 }
 0x1e7   : > { %v3380_v4 = vadd.f32 %v3379_v27, %v3378_v44  ;;  %v4897_v53 = vadd.f32 %v3377_v8, %v4844_v17 }
 0x1e9   : > { %v4900_v21 = vadd.f32 %v3380_v4, %v4853_v40 }
 0x1eb   : > { %v3381_v15 = vpop.f32.mrb[112].mxu0  ;;  %v3567_v63 = vpop.f32.mrb[80].mxu1 }
 0x1ec   : > { %v3616_v46 = vadd.f32 %v3615_v12, %v3567_v63  ;;  %v3382_v36 = vpop.f32.mrb[113].mxu0  ;;  %v2333_v60 = vpop.f32.mrb[81].mxu1 }
 0x1ed   : > { %v3383_v17 = vadd.f32 %v3382_v36, %v3381_v15  ;;  %v3620_v40 = vadd.f32 %v4860_v2, %v2333_v60  ;;  %v3384_v41 = vpop.f32.mrb[114].mxu0  ;;  %v3568_v19 = vpop.f32.mrb[82].mxu1 }
 0x1ee   : > { %v2501_v1 = vmul.f32 %v3616_v46, %v4906_v47  ;;  %v3624_v11 = vadd.f32 %v4867_v25, %v3568_v19  ;;  %v3385_v10 = vpop.f32.mrb[115].mxu0  ;;  %v2336_v12 = vpop.f32.mrb[83].mxu1  ;;  %v5128_v19 = vld [vmem:[#allocation5_spill] sm:$0xff] }
 0x1ef   : > { %v2499_v43 = vmul.f32 %v3620_v40, %v4906_v47  ;;  %v3386_v14 = vadd.f32 %v3385_v10, %v3384_v41  ;;  %v3628_v52 = vadd.f32 %v4863_v23, %v2336_v12  ;;  %v4921_v18 = vadd.f32 %v4747_v48, %v3383_v17 }
 0x1f0   : > { %v2540_v2 = vadd.f32 %v4911_v50, %v2501_v1  ;;  %v2502_v61 = vmul.f32 %v3624_v11, %v4906_v47 }
 0x1f1   : > { %v2538_v34 = vadd.f32 %v4911_v50, %v2499_v43  ;;  %v2500_v22 = vmul.f32 %v3628_v52, %v4906_v47  ;;  %v4928_v25 = vadd.f32 %v4751_v33, %v3386_v14 }
 0x1f2   : > { %v2572_v7 = vmax.f32 %v2540_v2, 0.0  ;;  %v2541_v49 = vadd.f32 %v4911_v50, %v2502_v61 }
 0x1f3   : > { %v2570_v5 = vmax.f32 %v2538_v34, 0.0  ;;  %v2539_v23 = vadd.f32 %v4911_v50, %v2500_v22  ;;  %v3387_v0 = vpop.f32.mrb[116].mxu0  ;;  %v3571_v48 = vpop.f32.mrb[84].mxu1 }
 0x1f4   : > { %2604 = vst [vmem:[%s4932_s30 + $0x10] sm:$0xff] %v2572_v7  ;;  %v2573_v59 = vmax.f32 %v2541_v49, 0.0  ;;  %v3632_v35 = vadd.f32 %v4876_v51, %v3571_v48  ;;  %v3388_v33 = vpop.f32.mrb[117].mxu0  ;;  %v2349_v16 = vpop.f32.mrb[85].mxu1 }
 0x1f5   : > { %2602 = vst [vmem:[%s4932_s30] sm:$0xff] %v2570_v5  ;;  %v2571_v9 = vmax.f32 %v2539_v23, 0.0  ;;  %v3389_v3 = vadd.f32 %v3388_v33, %v3387_v0  ;;  %v3636_v8 = vadd.f32 %v4870_v55, %v2349_v16  ;;  %v3390_v44 = vpop.f32.mrb[118].mxu0  ;;  %v3572_v27 = vpop.f32.mrb[86].mxu1 }
 0x1f6   : > { %2605 = vst [vmem:[%s4932_s30 + $0x18] sm:$0xff] %v2573_v59  ;;  %v2505_v4 = vmul.f32 %v3632_v35, %v4906_v47  ;;  %v3640_v15 = vadd.f32 %v4879_v20, %v3572_v27  ;;  %v3391_v63 = vpop.f32.mrb[119].mxu0  ;;  %v2352_v46 = vpop.f32.mrb[87].mxu1 }
 0x1f7   : > { %2603 = vst [vmem:[%s4932_s30 + $0x8] sm:$0xff] %v2571_v9  ;;  %v2503_v51 = vmul.f32 %v3636_v8, %v4906_v47  ;;  %v3392_v36 = vadd.f32 %v3391_v63, %v3390_v44  ;;  %v3644_v60 = vadd.f32 %v4873_v24, %v2352_v46  ;;  %v4945_v17 = vadd.f32 %v4755_v29, %v3389_v3  ;;  %v5129_v8 = vld [vmem:[#allocation6_spill] sm:$0xff] }
 0x1f8   : > { %v2544_v55 = vadd.f32 %v4911_v50, %v2505_v4  ;;  %v2506_v40 = vmul.f32 %v3640_v15, %v4906_v47 }
 0x1f9   : > { %v2542_v41 = vadd.f32 %v4911_v50, %v2503_v51  ;;  %v2504_v20 = vmul.f32 %v3644_v60, %v4906_v47  ;;  %v4952_v1 = vadd.f32 %v5128_v19, %v3392_v36 }
 0x1fa   : > { %v2576_v11 = vmax.f32 %v2544_v55, 0.0  ;;  %v2545_v10 = vadd.f32 %v4911_v50, %v2506_v40 }
 0x1fb   : > { %v2574_v24 = vmax.f32 %v2542_v41, 0.0  ;;  %v2543_v29 = vadd.f32 %v4911_v50, %v2504_v20  ;;  %v3393_v12 = vpop.f32.mrb[120].mxu0  ;;  %v3575_v43 = vpop.f32.mrb[88].mxu1 }
 0x1fc   : > { %2608 = vst [vmem:[%s4932_s30 + $0x30] sm:$0xff] %v2576_v11  ;;  %v2577_v14 = vmax.f32 %v2545_v10, 0.0  ;;  %v3648_v52 = vadd.f32 %v4887_v13, %v3575_v43  ;;  %v3394_v2 = vpop.f32.mrb[121].mxu0  ;;  %v2365_v61 = vpop.f32.mrb[89].mxu1 }
 0x1fd   : > { %2606 = vst [vmem:[%s4932_s30 + $0x20] sm:$0xff] %v2574_v24  ;;  %v2575_v34 = vmax.f32 %v2543_v29, 0.0  ;;  %v3395_v22 = vadd.f32 %v3394_v2, %v3393_v12  ;;  %v3652_v7 = vadd.f32 %v4882_v62, %v2365_v61  ;;  %v3396_v49 = vpop.f32.mrb[122].mxu0  ;;  %v3576_v5 = vpop.f32.mrb[90].mxu1 }
 0x1fe   : > { %2609 = vst [vmem:[%s4932_s30 + $0x38] sm:$0xff] %v2577_v14  ;;  %v2509_v23 = vmul.f32 %v3648_v52, %v4906_v47  ;;  %v3656_v0 = vadd.f32 %v4890_v30, %v3576_v5  ;;  %v3397_v48 = vpop.f32.mrb[123].mxu0  ;;  %v2368_v59 = vpop.f32.mrb[91].mxu1 }
 0x1ff   : > { %2607 = vst [vmem:[%s4932_s30 + $0x28] sm:$0xff] %v2575_v34  ;;  %v2507_v13 = vmul.f32 %v3652_v7, %v4906_v47  ;;  %v3398_v35 = vadd.f32 %v3397_v48, %v3396_v49  ;;  %v3660_v33 = vadd.f32 %v4884_v58, %v2368_v59  ;;  %v4967_v16 = vadd.f32 %v4763_v26, %v3395_v22 }
 0x200   : > { %v2548_v62 = vadd.f32 %v4911_v50, %v2509_v23  ;;  %v2510_v9 = vmul.f32 %v3656_v0, %v4906_v47 }
 0x201   : > { %v2546_v3 = vadd.f32 %v4911_v50, %v2507_v13  ;;  %v2508_v30 = vmul.f32 %v3660_v33, %v4906_v47  ;;  %v4974_v44 = vadd.f32 %v5129_v8, %v3398_v35 }
 0x202   : > { %v2580_v27 = vmax.f32 %v2548_v62, 0.0  ;;  %v2549_v4 = vadd.f32 %v4911_v50, %v2510_v9 }
 0x203   : > { %v2578_v58 = vmax.f32 %v2546_v3, 0.0  ;;  %v2547_v26 = vadd.f32 %v4911_v50, %v2508_v30  ;;  %v3399_v15 = vpop.f32.mrb[124].mxu0  ;;  %v3579_v63 = vpop.f32.mrb[92].mxu1 }
 0x204   : > { %2612 = vst [vmem:[%s4932_s30 + $0x50] sm:$0xff] %v2580_v27  ;;  %v2581_v46 = vmax.f32 %v2549_v4, 0.0  ;;  %v3664_v51 = vadd.f32 %v4897_v53, %v3579_v63  ;;  %v3400_v36 = vpop.f32.mrb[125].mxu0  ;;  %v2381_v60 = vpop.f32.mrb[93].mxu1 }
 0x205   : > { %2610 = vst [vmem:[%s4932_s30 + $0x40] sm:$0xff] %v2578_v58  ;;  %v2579_v55 = vmax.f32 %v2547_v26, 0.0  ;;  %v3401_v40 = vadd.f32 %v3400_v36, %v3399_v15  ;;  %v3668_v41 = vadd.f32 %v4892_v45, %v2381_v60  ;;  %v3402_v20 = vpop.f32.mrb[126].mxu0  ;;  %v3580_v19 = vpop.f32.mrb[94].mxu1 }
 0x206   : > { %2613 = vst [vmem:[%s4932_s30 + $0x58] sm:$0xff] %v2581_v46  ;;  %v2513_v11 = vmul.f32 %v3664_v51, %v4906_v47  ;;  %v3672_v10 = vadd.f32 %v4900_v21, %v3580_v19  ;;  %v3403_v24 = vpop.f32.mrb[127].mxu0  ;;  %v2384_v29 = vpop.f32.mrb[95].mxu1 }
 0x207   : > { %2611 = vst [vmem:[%s4932_s30 + $0x48] sm:$0xff] %v2579_v55  ;;  %v2511_v53 = vmul.f32 %v3668_v41, %v4906_v47  ;;  %v3404_v12 = vadd.f32 %v3403_v24, %v3402_v20  ;;  %v3676_v43 = vadd.f32 %v4894_v32, %v2384_v29  ;;  %v3690_v14 = vadd.f32 %v4771_v39, %v3401_v40 }
 0x208   : > { %v2552_v45 = vadd.f32 %v4911_v50, %v2513_v11  ;;  %v2514_v52 = vmul.f32 %v3672_v10, %v4906_v47 }
 0x209   : > { %v2550_v2 = vadd.f32 %v4911_v50, %v2511_v53  ;;  %v2512_v21 = vmul.f32 %v3676_v43, %v4906_v47  ;;  %v3696_v61 = vadd.f32 %v4775_v6, %v3404_v12 }
 0x20a   : > { %v2584_v34 = vmax.f32 %v2552_v45, 0.0  ;;  %v2553_v22 = vadd.f32 %v4911_v50, %v2514_v52 }
 0x20b   : > { %v2582_v7 = vmax.f32 %v2550_v2, 0.0  ;;  %v2551_v32 = vadd.f32 %v4911_v50, %v2512_v21  ;;  %v3405_v49 = vpop.f32.mrb[128].mxu0  ;;  %v3583_v39 = vpop.f32.mrb[0].mxu1 }
 0x20c   : > { %2616 = vst [vmem:[%s4932_s30 + $0x70] sm:$0xff] %v2584_v34  ;;  %v2585_v5 = vmax.f32 %v2553_v22, 0.0  ;;  %v3679_v23 = vadd.f32 %v4945_v17, %v3583_v39  ;;  %v3406_v0 = vpop.f32.mrb[129].mxu0  ;;  %v2397_v48 = vpop.f32.mrb[1].mxu1 }
 0x20d   : > { %2614 = vst [vmem:[%s4932_s30 + $0x60] sm:$0xff] %v2582_v7  ;;  %v2583_v59 = vmax.f32 %v2551_v32, 0.0  ;;  %v3407_v13 = vadd.f32 %v3406_v0, %v3405_v49  ;;  %v3682_v6 = vadd.f32 %v4921_v18, %v2397_v48  ;;  %v3408_v35 = vpop.f32.mrb[130].mxu0  ;;  %v3584_v33 = vpop.f32.mrb[2].mxu1 }
 0x20e   : > { %2617 = vst [vmem:[%s4932_s30 + $0x78] sm:$0xff] %v2585_v5  ;;  %v2517_v62 = vmul.f32 %v3679_v23, %v4906_v47  ;;  %v3685_v9 = vadd.f32 %v4952_v1, %v3584_v33  ;;  %v3409_v3 = vpop.f32.mrb[131].mxu0  ;;  %v2400_v30 = vpop.f32.mrb[3].mxu1 }
 0x20f   : > { %2615 = vst [vmem:[%s4932_s30 + $0x68] sm:$0xff] %v2583_v59  ;;  %v2515_v17 = vmul.f32 %v3682_v6, %v4906_v47  ;;  %v3410_v8 = vadd.f32 %v3409_v3, %v3408_v35  ;;  %v3688_v27 = vadd.f32 %v4928_v25, %v2400_v30  ;;  %v3705_v4 = vadd.f32 %v4787_v42, %v3407_v13 }
 0x210   : > { %v2556_v18 = vadd.f32 %v4911_v50, %v2517_v62  ;;  %v2518_v58 = vmul.f32 %v3685_v9, %v4906_v47 }
 0x211   : > { %v2554_v26 = vadd.f32 %v4911_v50, %v2515_v17  ;;  %v2516_v1 = vmul.f32 %v3688_v27, %v4906_v47  ;;  %v3711_v15 = vadd.f32 %v4797_v31, %v3410_v8 }
 0x212   : > { %v2588_v63 = vmax.f32 %v2556_v18, 0.0  ;;  %v2557_v46 = vadd.f32 %v4911_v50, %v2518_v58 }
 0x213   : > { %v2586_v51 = vmax.f32 %v2554_v26, 0.0  ;;  %v2555_v25 = vadd.f32 %v4911_v50, %v2516_v1  ;;  %v3411_v36 = vpop.f32.mrb[132].mxu0  ;;  %v3587_v42 = vpop.f32.mrb[4].mxu1 }
 0x214   : > { %2620 = vst [vmem:[%s4932_s30 + $0x90] sm:$0xff] %v2588_v63  ;;  %v2589_v60 = vmax.f32 %v2557_v46, 0.0  ;;  %v3691_v55 = vadd.f32 %v3690_v14, %v3587_v42  ;;  %v3412_v40 = vpop.f32.mrb[133].mxu0  ;;  %v2413_v41 = vpop.f32.mrb[5].mxu1 }
 0x215   : > { %2618 = vst [vmem:[%s4932_s30 + $0x80] sm:$0xff] %v2586_v51  ;;  %v2587_v20 = vmax.f32 %v2555_v25, 0.0  ;;  %v3413_v19 = vadd.f32 %v3412_v40, %v3411_v36  ;;  %v3694_v31 = vadd.f32 %v4967_v16, %v2413_v41  ;;  %v3414_v11 = vpop.f32.mrb[134].mxu0  ;;  %v3588_v10 = vpop.f32.mrb[6].mxu1 }
 0x216   : > { %2621 = vst [vmem:[%s4932_s30 + $0x98] sm:$0xff] %v2589_v60  ;;  %v2521_v24 = vmul.f32 %v3691_v55, %v4906_v47  ;;  %v3697_v29 = vadd.f32 %v3696_v61, %v3588_v10  ;;  %v3415_v53 = vpop.f32.mrb[135].mxu0  ;;  %v2416_v12 = vpop.f32.mrb[7].mxu1 }
 0x217   : > { %2619 = vst [vmem:[%s4932_s30 + $0x88] sm:$0xff] %v2587_v20  ;;  %v2519_v43 = vmul.f32 %v3694_v31, %v4906_v47  ;;  %v3416_v14 = vadd.f32 %v3415_v53, %v3414_v11  ;;  %v3700_v45 = vadd.f32 %v4974_v44, %v2416_v12  ;;  %v3702_v52 = vadd.f32 %v4809_v54, %v3413_v19 }
 0x218   : > { %v2560_v2 = vadd.f32 %v4911_v50, %v2521_v24  ;;  %v2522_v16 = vmul.f32 %v3697_v29, %v4906_v47 }
 0x219   : > { %v2558_v21 = vadd.f32 %v4911_v50, %v2519_v43  ;;  %v2520_v61 = vmul.f32 %v3700_v45, %v4906_v47  ;;  %v3708_v34 = vadd.f32 %v4819_v37, %v3416_v14 }
 0x21a   : > { %v2592_v22 = vmax.f32 %v2560_v2, 0.0  ;;  %v2561_v7 = vadd.f32 %v4911_v50, %v2522_v16 }
 0x21b   : > { %v2590_v32 = vmax.f32 %v2558_v21, 0.0  ;;  %v2559_v44 = vadd.f32 %v4911_v50, %v2520_v61  ;;  %v3417_v49 = vpop.f32.mrb[136].mxu0  ;;  %v3591_v54 = vpop.f32.mrb[8].mxu1 }
 0x21c   : > { %2624 = vst [vmem:[%s4932_s30 + $0xb0] sm:$0xff] %v2592_v22  ;;  %v2593_v39 = vmax.f32 %v2561_v7, 0.0  ;;  %v3703_v5 = vadd.f32 %v3702_v52, %v3591_v54  ;;  %v3418_v23 = vpop.f32.mrb[137].mxu0  ;;  %v2429_v0 = vpop.f32.mrb[9].mxu1 }
 0x21d   : > { %2622 = vst [vmem:[%s4932_s30 + $0xa0] sm:$0xff] %v2590_v32  ;;  %v2591_v48 = vmax.f32 %v2559_v44, 0.0  ;;  %v3419_v59 = vadd.f32 %v3418_v23, %v3417_v49  ;;  %v3706_v13 = vadd.f32 %v3705_v4, %v2429_v0  ;;  %v3420_v37 = vpop.f32.mrb[138].mxu0  ;;  %v3592_v6 = vpop.f32.mrb[10].mxu1 }
 0x21e   : > { %2625 = vst [vmem:[%s4932_s30 + $0xb8] sm:$0xff] %v2593_v39  ;;  %v2525_v35 = vmul.f32 %v3703_v5, %v4906_v47  ;;  %v3709_v33 = vadd.f32 %v3708_v34, %v3592_v6  ;;  %v3421_v62 = vpop.f32.mrb[139].mxu0  ;;  %v2432_v9 = vpop.f32.mrb[11].mxu1 }
 0x21f   : > { %2623 = vst [vmem:[%s4932_s30 + $0xa8] sm:$0xff] %v2591_v48  ;;  %v2523_v3 = vmul.f32 %v3706_v13, %v4906_v47  ;;  %v3422_v30 = vadd.f32 %v3421_v62, %v3420_v37  ;;  %v3712_v17 = vadd.f32 %v3711_v15, %v2432_v9  ;;  %v3717_v8 = vadd.f32 %v4831_v56, %v3419_v59 }
 0x220   : > { %v2564_v27 = vadd.f32 %v4911_v50, %v2525_v35  ;;  %v2526_v4 = vmul.f32 %v3709_v33, %v4906_v47 }
 0x221   : > { %v2562_v18 = vadd.f32 %v4911_v50, %v2523_v3  ;;  %v2524_v58 = vmul.f32 %v3712_v17, %v4906_v47  ;;  %v3723_v26 = vadd.f32 %v4839_v28, %v3422_v30 }
 0x222   : > { %v2596_v1 = vmax.f32 %v2564_v27, 0.0  ;;  %v2565_v63 = vadd.f32 %v4911_v50, %v2526_v4 }
 0x223   : > { %v2594_v46 = vmax.f32 %v2562_v18, 0.0  ;;  %v2563_v15 = vadd.f32 %v4911_v50, %v2524_v58  ;;  %v3423_v56 = vpop.f32.mrb[140].mxu0  ;;  %v3595_v51 = vpop.f32.mrb[12].mxu1 }
 0x224   : > { %2628 = vst [vmem:[%s4932_s30 + $0xd0] sm:$0xff] %v2596_v1  ;;  %v2597_v25 = vmax.f32 %v2565_v63, 0.0  ;;  %v3424_v36 = vpop.f32.mrb[141].mxu0  ;;  %v2445_v42 = vpop.f32.mrb[13].mxu1 }
 0x225   : > { %2626 = vst [vmem:[%s4932_s30 + $0xc0] sm:$0xff] %v2594_v46  ;;  %v2595_v60 = vmax.f32 %v2563_v15, 0.0  ;;  %v3425_v55 = vadd.f32 %v3424_v36, %v3423_v56  ;;  %v3718_v40 = vadd.f32 %v3717_v8, %v2445_v42  ;;  %v3426_v41 = vpop.f32.mrb[142].mxu0  ;;  %v3596_v28 = vpop.f32.mrb[14].mxu1 }
 0x226   : > { %2629 = vst [vmem:[%s4932_s30 + $0xd8] sm:$0xff] %v2597_v25  ;;  %v3427_v20 = vpop.f32.mrb[143].mxu0  ;;  %v2448_v19 = vpop.f32.mrb[15].mxu1 }
 0x227   : > { %2627 = vst [vmem:[%s4932_s30 + $0xc8] sm:$0xff] %v2595_v60  ;;  %v3714_v31 = vadd.f32 %v4849_v38, %v3425_v55  ;;  %v2527_v11 = vmul.f32 %v3718_v40, %v4906_v47  ;;  %v3428_v10 = vadd.f32 %v3427_v20, %v3426_v41  ;;  %v3724_v24 = vadd.f32 %v3723_v26, %v2448_v19 }
 0x229   : > { %v3715_v29 = vadd.f32 %v3714_v31, %v3595_v51  ;;  %v2566_v53 = vadd.f32 %v4911_v50, %v2527_v11  ;;  %v3720_v12 = vadd.f32 %v4857_v57, %v3428_v10  ;;  %v2528_v43 = vmul.f32 %v3724_v24, %v4906_v47 }
 0x22b   : > { %v2529_v14 = vmul.f32 %v3715_v29, %v4906_v47  ;;  %v2598_v45 = vmax.f32 %v2566_v53, 0.0  ;;  %v3721_v38 = vadd.f32 %v3720_v12, %v3596_v28  ;;  %v2567_v52 = vadd.f32 %v4911_v50, %v2528_v43 }
 0x22d   : > { %v2568_v2 = vadd.f32 %v4911_v50, %v2529_v14  ;;  %2630 = vst [vmem:[%s4932_s30 + $0xe0] sm:$0xff] %v2598_v45  ;;  %v2530_v16 = vmul.f32 %v3721_v38, %v4906_v47  ;;  %v2599_v21 = vmax.f32 %v2567_v52, 0.0 }
 0x22f   : > { %v2600_v57 = vmax.f32 %v2568_v2, 0.0  ;;  %v2569_v61 = vadd.f32 %v4911_v50, %v2530_v16  ;;  %2631 = vst [vmem:[%s4932_s30 + $0xe8] sm:$0xff] %v2599_v21 }
 0x231   : > { %2632 = vst [vmem:[%s4932_s30 + $0xf0] sm:$0xff] %v2600_v57  ;;  %v2601_v34 = vmax.f32 %v2569_v61, 0.0 }
 0x233   : > { %2633 = vst [vmem:[%s4932_s30 + $0xf8] sm:$0xff] %v2601_v34 }
 0x234   : > { %4003 = shalt.err (!%p4000_p5)
}
 0x235   : > { %s4004_s24 = scalar_lea.hbm %s5065_s9, 4096  ;;  %s4008_s22 = scalar_lea.hbm %s5123_s4, 8192 }
 0x236   : > { %p4005_p6 = scmp.ne.s32.totalorder %s5065_s9, %s4004_s24  ;;  %p4009_p10 = scmp.lt.u32.totalorder %s5065_s9, %s5123_s4 }
 0x237   : > { %p4010_p11 = scmp.lt.u32.totalorder %s4008_s22, %s4004_s24  ;;  %p4012_p13 = scmp.lt.u32.totalorder %s4004_s24, %s5065_s9 }
 0x238   : > { %p4006_p7 = pnand %p4005_p6, %p4138_p4 }
 0x239   : > { %p4011_p12 = por %p4010_p11, %p4009_p10 }
 0x23a   : > { %p4007_p9 = pneg %p4006_p7 }
 0x23b   : > { %p4013_p0 = por %p4012_p13, %p4011_p12 }
 0x23d   : > { %p4014_p1 = pnand %p4013_p0, %p4007_p9 }
 0x23f   : > { %4017 = shalt.err (!%p4014_p1)
}
 0x240   : > { %s4071_s30 = smov 128   ;;  %s4072_s5 = smov 8  }
 0x241   : > { %3774 = dma.vmem_to_hbm [thread:$0]  (%p4138_p4), %s5067_s6, 4096, %s5065_s9, %s5073_s18, %s4071_s30, %s4071_s30, %s4072_s5  }
 0x242 PF: > { %p3780_p2 = scmp.ge.s32.totalorder %s4068_s20, 2  ;;  %s2664_s7 = sand.u32 1, %s4048_s15  }
 0x243   : > { %s2665_s8 = scalar_lea.sflag [#allocation3], %s2664_s7 }
 0x244   : > { %p3777_p3 = pnand %p3780_p2, %p4145_p8 }
 0x246   : > { %4043 = dma.done.wait (!%p3777_p3), %s2665_s8, 4096  }
 0x247   : > { %4045 = vsyncadd (!%p3777_p3), %s2665_s8, 4294963200  ;;  %s17_s20 = sadd.s32 1, %s4068_s20   ;;  %s5130_s15 = smov %s4052_s16 }
 0x248   : > { %p14_p5 = scmp.ge.s32.totalorder %s17_s20, 4   ;;  %s5131_s16 = smov %s4056_s17 }
 0x249   : > { %s5132_s17 = smov %s4151_s28  ;;  %s5133_s18 = smov %s4064_s19 }
 0x24a   : > { %s5134_s19 = smov %s5136_s23  ;;  %16 = sbr.rel (!%p14_p5) target bundleno = 4 (0x4), region = 82 }
 0x251   :  { %2670 = vsyncpa [#allocation3], 1 }
 0x252   :  { %2672 = vsyncpa [#allocation3 + $0x1], 1 }

</bundles_post_ra>
